<compile_context>
chip_gen: v5e
topology: v5e:2x2
jax: 0.10.0
libtpu: 0.0.40
codegen_flags: <defaults>
</compile_context>

<pallas_src>
import functools

import numpy as np
import jax
import jax.numpy as jnp
from jax import lax
from jax.experimental import pallas as pl
from jax.experimental.pallas import tpu as pltpu


# ----------------------------- Pallas kernel ------------------------------

def ghostconv_kernel(x_ref, w1_ref, sh1_ref, dwk_ref, sh2_ref, o_ref,
                     *, H, W, c_):
    """Fused GhostConv forward for one batch element.

    Channels-major, flattened-spatial layout (H*W on the lane axis):
      x_ref  : (1, C1, H*W)   input
      w1_ref : (c_, C1)       cv1 1x1 weight, BN1 scale pre-folded
      sh1    : (c_, 1)        cv1 folded BN shift
      dwk_ref: (c_, 25)       cv2 depthwise 5x5 weight (taps row-major),
                              BN2 scale pre-folded
      sh2    : (c_, 1)        cv2 folded BN shift
      o_ref  : (1, 2*c_, H*W) output = concat([y, z], channel axis)
    """
    HW = H * W
    x = x_ref[0].astype(jnp.float32)                        # (C1, HW) lane-dense

    # ---- cv1: 1x1 conv == channel matmul (MXU) + BN shift + SiLU (EUP) ----
    y = jnp.dot(w1_ref[...], x, preferred_element_type=jnp.float32)   # (c_, HW)
    y = y + sh1_ref[...]
    y = y * jax.nn.sigmoid(y)                               # SiLU
    o_ref[0, 0:c_, :] = y.astype(o_ref.dtype)               # lane-dense store

    # ---- cv2: depthwise 5x5 conv on y (pad=2) + BN shift + SiLU ----------
    # For tap (dy, dx) the source pixel of output p = r*W + c is flat position
    # p + dy*W + dx.  Row overflow lands in the zero margin; column wrap is
    # killed with a per-dx lane mask (hoisted out of the 25-tap loop).
    P = 2 * W + 2                                           # >= max |flat offset|
    zeros = jnp.zeros((c_, P), jnp.float32)
    ypad = jnp.concatenate([zeros, y, zeros], axis=1)       # (c_, HW + 2P)
    col = lax.broadcasted_iota(jnp.int32, (1, HW), 1) % W   # output column index
    col_ok = {dx: (col + dx >= 0) & (col + dx < W) for dx in range(-2, 3)}
    dwk = dwk_ref[...]                                      # (c_, 25) BN-scaled

    acc = jnp.zeros((c_, HW), jnp.float32)
    for dy in range(-2, 3):
        for dx in range(-2, 3):
            t = (dy + 2) * 5 + (dx + 2)
            off = dy * W + dx
            shifted = ypad[:, P + off:P + off + HW]         # y_flat[p + off]
            w_tap = dwk[:, t:t + 1]                         # (c_, 1) lane-bcast
            if dx == 0:                                     # no column wrap
                acc = acc + shifted * w_tap
            else:
                acc = acc + jnp.where(col_ok[dx], shifted, 0.0) * w_tap

    z = acc + sh2_ref[...]
    z = z * jax.nn.sigmoid(z)                               # SiLU
    o_ref[0, c_:2 * c_, :] = z.astype(o_ref.dtype)          # lane-dense store


# ----------------------------- wrapper / glue ------------------------------

def ghostconv_pallas(x_nchw, p, eps=1e-5):
    B, C1, H, W = x_nchw.shape
    c_ = p['w1'].shape[0]
    C2 = 2 * c_
    HW = H * W

    # Fold BatchNorm (eval mode) into per-channel scale / shift, then fold the
    # scales straight into the (tiny) conv weights so the kernel only adds the
    # shift.  This is weight-sized wrapper work, done once per call.
    sc1 = p['bn1_gamma'] / jnp.sqrt(p['bn1_var'] + eps)
    sh1 = p['bn1_beta'] - p['bn1_mean'] * sc1
    sc2 = p['bn2_gamma'] / jnp.sqrt(p['bn2_var'] + eps)
    sh2 = p['bn2_beta'] - p['bn2_mean'] * sc2
    w1s = p['w1'] * sc1[:, None]            # (c_, C1)
    dws = p['dw'] * sc2[:, None]            # (c_, 25)

    # Input stays channels-major (NCHW); flattening HW is a free reshape.
    xf = x_nchw.reshape(B, C1, HW).astype(jnp.float32)

    kernel = functools.partial(ghostconv_kernel, H=H, W=W, c_=c_)
    out = pl.pallas_call(
        kernel,
        out_shape=jax.ShapeDtypeStruct((B, C2, HW), jnp.float32),
        grid=(B,),
        in_specs=[
            pl.BlockSpec((1, C1, HW), lambda b: (b, 0, 0)),
            pl.BlockSpec((c_, C1), lambda b: (0, 0)),
            pl.BlockSpec((c_, 1), lambda b: (0, 0)),
            pl.BlockSpec((c_, 25), lambda b: (0, 0)),
            pl.BlockSpec((c_, 1), lambda b: (0, 0)),
        ],
        out_specs=pl.BlockSpec((1, C2, HW), lambda b: (b, 0, 0)),
        compiler_params=pltpu.CompilerParams(
            dimension_semantics=("parallel",)),
    )(xf, w1s, sh1.reshape(c_, 1), dws, sh2.reshape(c_, 1))

    return out.reshape(B, C2, H, W)


def init_params(key, c1, c2):
    """Deterministic synthetic parameters matching GhostConv(c1, c2, k=1)."""
    c_ = c2 // 2
    ks = jax.random.split(key, 10)
    p = {}
    p['w1'] = 0.3 * jax.random.normal(ks[0], (c_, c1), jnp.float32)     # cv1 1x1
    p['dw'] = 0.2 * jax.random.normal(ks[1], (c_, 25), jnp.float32)     # cv2 5x5 dw
    p['bn1_gamma'] = 1.0 + 0.1 * jax.random.normal(ks[2], (c_,), jnp.float32)
    p['bn1_beta'] = 0.05 * jax.random.normal(ks[3], (c_,), jnp.float32)
    p['bn1_mean'] = 0.05 * jax.random.normal(ks[4], (c_,), jnp.float32)
    p['bn1_var'] = jnp.abs(1.0 + 0.1 * jax.random.normal(ks[5], (c_,), jnp.float32))
    p['bn2_gamma'] = 1.0 + 0.1 * jax.random.normal(ks[6], (c_,), jnp.float32)
    p['bn2_beta'] = 0.05 * jax.random.normal(ks[7], (c_,), jnp.float32)
    p['bn2_mean'] = 0.05 * jax.random.normal(ks[8], (c_,), jnp.float32)
    p['bn2_var'] = jnp.abs(1.0 + 0.1 * jax.random.normal(ks[9], (c_,), jnp.float32))
    return p


# --------------------------- pure-JAX reference ----------------------------

def ghostconv_ref(x, p, eps=1e-5):
    c_ = p['w1'].shape[0]
    dn = ('NCHW', 'OIHW', 'NCHW')

    def bn(v, g, b, m, var):
        return (v - m[None, :, None, None]) / jnp.sqrt(var[None, :, None, None] + eps) \
               * g[None, :, None, None] + b[None, :, None, None]

    def silu(v):
        return v * jax.nn.sigmoid(v)

    # cv1: 1x1 conv (no bias) + BN + SiLU
    w1 = p['w1'].reshape(c_, -1, 1, 1)
    y = lax.conv_general_dilated(x, w1, (1, 1), ((0, 0), (0, 0)),
                                 dimension_numbers=dn)
    y = silu(bn(y, p['bn1_gamma'], p['bn1_beta'], p['bn1_mean'], p['bn1_var']))

    # cv2: depthwise 5x5 conv (groups = c_, pad 2) + BN + SiLU
    dw = p['dw'].reshape(c_, 1, 5, 5)
    z = lax.conv_general_dilated(y, dw, (1, 1), ((2, 2), (2, 2)),
                                 dimension_numbers=dn, feature_group_count=c_)
    z = silu(bn(z, p['bn2_gamma'], p['bn2_beta'], p['bn2_mean'], p['bn2_var']))

    return jnp.concatenate([y, z], axis=1)


# --------------------------------- main ------------------------------------

if __name__ == "__main__":
    key = jax.random.PRNGKey(0)
    kx, kp = jax.random.split(key)
    B, C1, C2, H, W = 2, 8, 16, 16, 16        # GhostConv(c1=8, c2=16) -> c_ = 8
    x = jax.random.normal(kx, (B, C1, H, W), jnp.float32)
    params = init_params(kp, C1, C2)

    fwd = jax.jit(ghostconv_pallas)
    out = jax.block_until_ready(fwd(x, params))
    ref = ghostconv_ref(x, params)

    assert out.shape == (B, C2, H, W)
    np.testing.assert_allclose(np.asarray(out), np.asarray(ref), atol=1e-4, rtol=1e-4)
    print("KERNEL_OK")
</pallas_src>

<mosaic_0001>
module attributes {stable_mosaic.version = 11 : i64} {
  func.func @ghostconv_kernel(%arg0: i32, %arg1: memref<1x8x256xf32, #tpu.memory_space<vmem>>, %arg2: memref<8x8xf32, #tpu.memory_space<vmem>>, %arg3: memref<8x1xf32, #tpu.memory_space<vmem>>, %arg4: memref<8x25xf32, #tpu.memory_space<vmem>>, %arg5: memref<8x1xf32, #tpu.memory_space<vmem>>, %arg6: memref<1x16x256xf32, #tpu.memory_space<vmem>>) attributes {dimension_semantics = [#tpu.dimension_semantics<parallel>], iteration_bounds = array<i64: 2>, scalar_prefetch = 0 : i64, scratch_operands = 0 : i64, tpu.core_type = #tpu.core_type<tc>, window_params = [{transform_indices = @transform_0, window_bounds = array<i64: 1, 8, 256>}, {pipeline_mode = #tpu.pipeline_mode<synchronous>, transform_indices = @transform_1, window_bounds = array<i64: 8, 8>}, {pipeline_mode = #tpu.pipeline_mode<synchronous>, transform_indices = @transform_2, window_bounds = array<i64: 8, 1>}, {pipeline_mode = #tpu.pipeline_mode<synchronous>, transform_indices = @transform_3, window_bounds = array<i64: 8, 25>}, {pipeline_mode = #tpu.pipeline_mode<synchronous>, transform_indices = @transform_4, window_bounds = array<i64: 8, 1>}, {transform_indices = @transform_5, window_bounds = array<i64: 1, 16, 256>}]} {
    %c0 = arith.constant 0 : index
    %c0_0 = arith.constant 0 : index
    %c0_1 = arith.constant 0 : index
    %0 = vector.load %arg1[%c0, %c0_0, %c0_1] : memref<1x8x256xf32, #tpu.memory_space<vmem>>, vector<1x8x256xf32>
    %1 = vector.shape_cast %0 : vector<1x8x256xf32> to vector<8x256xf32>
    %c0_2 = arith.constant 0 : index
    %c0_3 = arith.constant 0 : index
    %2 = vector.load %arg2[%c0_2, %c0_3] : memref<8x8xf32, #tpu.memory_space<vmem>>, vector<8x8xf32>
    %cst = arith.constant dense<0.000000e+00> : vector<8x256xf32>
    %3 = tpu.matmul %2, %1, %cst {dimension_numbers = #tpu.dot_dimension_numbers<[1], [0], [0], [1], [0, 0, 1, 1], [], []>} : vector<8x8xf32>, vector<8x256xf32>, vector<8x256xf32> -> vector<8x256xf32>
    %c0_4 = arith.constant 0 : index
    %c0_5 = arith.constant 0 : index
    %4 = vector.load %arg3[%c0_4, %c0_5] : memref<8x1xf32, #tpu.memory_space<vmem>>, vector<8x1xf32>
    %5 = vector.broadcast %4 : vector<8x1xf32> to vector<8x256xf32>
    %6 = arith.addf %3, %5 : vector<8x256xf32>
    %7 = arith.negf %6 : vector<8x256xf32>
    %8 = math.exp %7 : vector<8x256xf32>
    %cst_6 = arith.constant 1.000000e+00 : f32
    %9 = vector.broadcast %cst_6 : f32 to vector<8x256xf32>
    %10 = arith.addf %9, %8 : vector<8x256xf32>
    %11 = arith.divf %9, %10 : vector<8x256xf32>
    %12 = arith.mulf %6, %11 : vector<8x256xf32>
    %c0_7 = arith.constant 0 : index
    %c0_8 = arith.constant 0 : index
    %c0_9 = arith.constant 0 : index
    %13 = vector.load %arg6[%c0_7, %c0_8, %c0_9] : memref<1x16x256xf32, #tpu.memory_space<vmem>>, vector<1x8x256xf32>
    %14 = vector.shape_cast %13 : vector<1x8x256xf32> to vector<8x256xf32>
    %15 = vector.shape_cast %12 : vector<8x256xf32> to vector<1x8x256xf32>
    tpu.vector_store %arg6[%c0_7, %c0_8, %c0_9], %15 {strides = array<i32>} : memref<1x16x256xf32, #tpu.memory_space<vmem>>, vector<1x8x256xf32>,
    %cst_10 = arith.constant 0.000000e+00 : f32
    %16 = vector.broadcast %cst_10 : f32 to vector<8x34xf32>
    %17 = tpu.concatenate %16, %12, %16 in 1 : vector<8x34xf32>, vector<8x256xf32>, vector<8x34xf32> -> vector<8x324xf32>
    %18 = tpu.iota {dimensions = array<i32: 1>} : vector<1x256xi32>
    %c16_i32 = arith.constant 16 : i32
    %c0_i32 = arith.constant 0 : i32
    %19 = arith.cmpi eq, %c16_i32, %c0_i32 : i32
    %c1_i32 = arith.constant 1 : i32
    %20 = arith.select %19, %c1_i32, %c16_i32 : i32
    %21 = vector.broadcast %20 : i32 to vector<1x256xi32>
    %22 = arith.remsi %18, %21 : vector<1x256xi32>
    %c0_i32_11 = arith.constant 0 : i32
    %23 = vector.broadcast %c0_i32_11 : i32 to vector<1x256xi32>
    %24 = arith.cmpi ne, %22, %23 : vector<1x256xi32>
    %c0_i32_12 = arith.constant 0 : i32
    %25 = vector.broadcast %c0_i32_12 : i32 to vector<1x256xi32>
    %26 = arith.cmpi slt, %22, %25 : vector<1x256xi32>
    %c0_i32_13 = arith.constant 0 : i32
    %27 = arith.cmpi slt, %20, %c0_i32_13 : i32
    %28 = vector.broadcast %27 : i1 to vector<1x256xi1>
    %29 = vector.broadcast %28 : vector<1x256xi1> to vector<1x256xi1>
    %30 = arith.xori %26, %29 : vector<1x256xi1>
    %31 = arith.andi %30, %24 : vector<1x256xi1>
    %32 = vector.broadcast %20 : i32 to vector<1x256xi32>
    %33 = arith.addi %22, %32 : vector<1x256xi32>
    %34 = arith.select %31, %33, %22 : vector<1x256xi1>, vector<1x256xi32>
    %c-2_i32 = arith.constant -2 : i32
    %35 = vector.broadcast %c-2_i32 : i32 to vector<1x256xi32>
    %36 = arith.addi %34, %35 : vector<1x256xi32>
    %c0_i32_14 = arith.constant 0 : i32
    %37 = vector.broadcast %c0_i32_14 : i32 to vector<1x256xi32>
    %38 = arith.cmpi sge, %36, %37 : vector<1x256xi32>
    %c-2_i32_15 = arith.constant -2 : i32
    %39 = vector.broadcast %c-2_i32_15 : i32 to vector<1x256xi32>
    %40 = arith.addi %34, %39 : vector<1x256xi32>
    %c16_i32_16 = arith.constant 16 : i32
    %41 = vector.broadcast %c16_i32_16 : i32 to vector<1x256xi32>
    %42 = arith.cmpi slt, %40, %41 : vector<1x256xi32>
    %43 = arith.andi %38, %42 : vector<1x256xi1>
    %c-1_i32 = arith.constant -1 : i32
    %44 = vector.broadcast %c-1_i32 : i32 to vector<1x256xi32>
    %45 = arith.addi %34, %44 : vector<1x256xi32>
    %c0_i32_17 = arith.constant 0 : i32
    %46 = vector.broadcast %c0_i32_17 : i32 to vector<1x256xi32>
    %47 = arith.cmpi sge, %45, %46 : vector<1x256xi32>
    %c-1_i32_18 = arith.constant -1 : i32
    %48 = vector.broadcast %c-1_i32_18 : i32 to vector<1x256xi32>
    %49 = arith.addi %34, %48 : vector<1x256xi32>
    %c16_i32_19 = arith.constant 16 : i32
    %50 = vector.broadcast %c16_i32_19 : i32 to vector<1x256xi32>
    %51 = arith.cmpi slt, %49, %50 : vector<1x256xi32>
    %52 = arith.andi %47, %51 : vector<1x256xi1>
    %c1_i32_20 = arith.constant 1 : i32
    %53 = vector.broadcast %c1_i32_20 : i32 to vector<1x256xi32>
    %54 = arith.addi %34, %53 : vector<1x256xi32>
    %c0_i32_21 = arith.constant 0 : i32
    %55 = vector.broadcast %c0_i32_21 : i32 to vector<1x256xi32>
    %56 = arith.cmpi sge, %54, %55 : vector<1x256xi32>
    %c1_i32_22 = arith.constant 1 : i32
    %57 = vector.broadcast %c1_i32_22 : i32 to vector<1x256xi32>
    %58 = arith.addi %34, %57 : vector<1x256xi32>
    %c16_i32_23 = arith.constant 16 : i32
    %59 = vector.broadcast %c16_i32_23 : i32 to vector<1x256xi32>
    %60 = arith.cmpi slt, %58, %59 : vector<1x256xi32>
    %61 = arith.andi %56, %60 : vector<1x256xi1>
    %c2_i32 = arith.constant 2 : i32
    %62 = vector.broadcast %c2_i32 : i32 to vector<1x256xi32>
    %63 = arith.addi %34, %62 : vector<1x256xi32>
    %c0_i32_24 = arith.constant 0 : i32
    %64 = vector.broadcast %c0_i32_24 : i32 to vector<1x256xi32>
    %65 = arith.cmpi sge, %63, %64 : vector<1x256xi32>
    %c2_i32_25 = arith.constant 2 : i32
    %66 = vector.broadcast %c2_i32_25 : i32 to vector<1x256xi32>
    %67 = arith.addi %34, %66 : vector<1x256xi32>
    %c16_i32_26 = arith.constant 16 : i32
    %68 = vector.broadcast %c16_i32_26 : i32 to vector<1x256xi32>
    %69 = arith.cmpi slt, %67, %68 : vector<1x256xi32>
    %70 = arith.andi %65, %69 : vector<1x256xi1>
    %c0_27 = arith.constant 0 : index
    %c0_28 = arith.constant 0 : index
    %71 = vector.load %arg4[%c0_27, %c0_28] : memref<8x25xf32, #tpu.memory_space<vmem>>, vector<8x25xf32>
    %cst_29 = arith.constant 0.000000e+00 : f32
    %72 = vector.broadcast %cst_29 : f32 to vector<8x256xf32>
    %73 = vector.extract_strided_slice %17 {offsets = [0, 0], sizes = [8, 256], strides = [1, 1]} : vector<8x324xf32> to vector<8x256xf32>
    %74 = vector.extract_strided_slice %71 {offsets = [0, 0], sizes = [8, 1], strides = [1, 1]} : vector<8x25xf32> to vector<8x1xf32>
    %cst_30 = arith.constant 0.000000e+00 : f32
    %75 = vector.shape_cast %43 : vector<1x256xi1> to vector<1x256xi1>
    %76 = vector.broadcast %75 : vector<1x256xi1> to vector<8x256xi1>
    %77 = vector.broadcast %cst_30 : f32 to vector<8x256xf32>
    %78 = arith.select %76, %73, %77 : vector<8x256xi1>, vector<8x256xf32>
    %79 = vector.broadcast %74 : vector<8x1xf32> to vector<8x256xf32>
    %80 = arith.mulf %78, %79 : vector<8x256xf32>
    %81 = arith.addf %72, %80 : vector<8x256xf32>
    %82 = vector.extract_strided_slice %17 {offsets = [0, 1], sizes = [8, 256], strides = [1, 1]} : vector<8x324xf32> to vector<8x256xf32>
    %83 = vector.extract_strided_slice %71 {offsets = [0, 1], sizes = [8, 1], strides = [1, 1]} : vector<8x25xf32> to vector<8x1xf32>
    %cst_31 = arith.constant 0.000000e+00 : f32
    %84 = vector.shape_cast %52 : vector<1x256xi1> to vector<1x256xi1>
    %85 = vector.broadcast %84 : vector<1x256xi1> to vector<8x256xi1>
    %86 = vector.broadcast %cst_31 : f32 to vector<8x256xf32>
    %87 = arith.select %85, %82, %86 : vector<8x256xi1>, vector<8x256xf32>
    %88 = vector.broadcast %83 : vector<8x1xf32> to vector<8x256xf32>
    %89 = arith.mulf %87, %88 : vector<8x256xf32>
    %90 = arith.addf %81, %89 : vector<8x256xf32>
    %91 = vector.extract_strided_slice %17 {offsets = [0, 2], sizes = [8, 256], strides = [1, 1]} : vector<8x324xf32> to vector<8x256xf32>
    %92 = vector.extract_strided_slice %71 {offsets = [0, 2], sizes = [8, 1], strides = [1, 1]} : vector<8x25xf32> to vector<8x1xf32>
    %93 = vector.broadcast %92 : vector<8x1xf32> to vector<8x256xf32>
    %94 = arith.mulf %91, %93 : vector<8x256xf32>
    %95 = arith.addf %90, %94 : vector<8x256xf32>
    %96 = vector.extract_strided_slice %17 {offsets = [0, 3], sizes = [8, 256], strides = [1, 1]} : vector<8x324xf32> to vector<8x256xf32>
    %97 = vector.extract_strided_slice %71 {offsets = [0, 3], sizes = [8, 1], strides = [1, 1]} : vector<8x25xf32> to vector<8x1xf32>
    %cst_32 = arith.constant 0.000000e+00 : f32
    %98 = vector.shape_cast %61 : vector<1x256xi1> to vector<1x256xi1>
    %99 = vector.broadcast %98 : vector<1x256xi1> to vector<8x256xi1>
    %100 = vector.broadcast %cst_32 : f32 to vector<8x256xf32>
    %101 = arith.select %99, %96, %100 : vector<8x256xi1>, vector<8x256xf32>
    %102 = vector.broadcast %97 : vector<8x1xf32> to vector<8x256xf32>
    %103 = arith.mulf %101, %102 : vector<8x256xf32>
    %104 = arith.addf %95, %103 : vector<8x256xf32>
    %105 = vector.extract_strided_slice %17 {offsets = [0, 4], sizes = [8, 256], strides = [1, 1]} : vector<8x324xf32> to vector<8x256xf32>
    %106 = vector.extract_strided_slice %71 {offsets = [0, 4], sizes = [8, 1], strides = [1, 1]} : vector<8x25xf32> to vector<8x1xf32>
    %cst_33 = arith.constant 0.000000e+00 : f32
    %107 = vector.shape_cast %70 : vector<1x256xi1> to vector<1x256xi1>
    %108 = vector.broadcast %107 : vector<1x256xi1> to vector<8x256xi1>
    %109 = vector.broadcast %cst_33 : f32 to vector<8x256xf32>
    %110 = arith.select %108, %105, %109 : vector<8x256xi1>, vector<8x256xf32>
    %111 = vector.broadcast %106 : vector<8x1xf32> to vector<8x256xf32>
    %112 = arith.mulf %110, %111 : vector<8x256xf32>
    %113 = arith.addf %104, %112 : vector<8x256xf32>
    %114 = vector.extract_strided_slice %17 {offsets = [0, 16], sizes = [8, 256], strides = [1, 1]} : vector<8x324xf32> to vector<8x256xf32>
    %115 = vector.extract_strided_slice %71 {offsets = [0, 5], sizes = [8, 1], strides = [1, 1]} : vector<8x25xf32> to vector<8x1xf32>
    %cst_34 = arith.constant 0.000000e+00 : f32
    %116 = vector.shape_cast %43 : vector<1x256xi1> to vector<1x256xi1>
    %117 = vector.broadcast %116 : vector<1x256xi1> to vector<8x256xi1>
    %118 = vector.broadcast %cst_34 : f32 to vector<8x256xf32>
    %119 = arith.select %117, %114, %118 : vector<8x256xi1>, vector<8x256xf32>
    %120 = vector.broadcast %115 : vector<8x1xf32> to vector<8x256xf32>
    %121 = arith.mulf %119, %120 : vector<8x256xf32>
    %122 = arith.addf %113, %121 : vector<8x256xf32>
    %123 = vector.extract_strided_slice %17 {offsets = [0, 17], sizes = [8, 256], strides = [1, 1]} : vector<8x324xf32> to vector<8x256xf32>
    %124 = vector.extract_strided_slice %71 {offsets = [0, 6], sizes = [8, 1], strides = [1, 1]} : vector<8x25xf32> to vector<8x1xf32>
    %cst_35 = arith.constant 0.000000e+00 : f32
    %125 = vector.shape_cast %52 : vector<1x256xi1> to vector<1x256xi1>
    %126 = vector.broadcast %125 : vector<1x256xi1> to vector<8x256xi1>
    %127 = vector.broadcast %cst_35 : f32 to vector<8x256xf32>
    %128 = arith.select %126, %123, %127 : vector<8x256xi1>, vector<8x256xf32>
    %129 = vector.broadcast %124 : vector<8x1xf32> to vector<8x256xf32>
    %130 = arith.mulf %128, %129 : vector<8x256xf32>
    %131 = arith.addf %122, %130 : vector<8x256xf32>
    %132 = vector.extract_strided_slice %17 {offsets = [0, 18], sizes = [8, 256], strides = [1, 1]} : vector<8x324xf32> to vector<8x256xf32>
    %133 = vector.extract_strided_slice %71 {offsets = [0, 7], sizes = [8, 1], strides = [1, 1]} : vector<8x25xf32> to vector<8x1xf32>
    %134 = vector.broadcast %133 : vector<8x1xf32> to vector<8x256xf32>
    %135 = arith.mulf %132, %134 : vector<8x256xf32>
    %136 = arith.addf %131, %135 : vector<8x256xf32>
    %137 = vector.extract_strided_slice %17 {offsets = [0, 19], sizes = [8, 256], strides = [1, 1]} : vector<8x324xf32> to vector<8x256xf32>
    %138 = vector.extract_strided_slice %71 {offsets = [0, 8], sizes = [8, 1], strides = [1, 1]} : vector<8x25xf32> to vector<8x1xf32>
    %cst_36 = arith.constant 0.000000e+00 : f32
    %139 = vector.shape_cast %61 : vector<1x256xi1> to vector<1x256xi1>
    %140 = vector.broadcast %139 : vector<1x256xi1> to vector<8x256xi1>
    %141 = vector.broadcast %cst_36 : f32 to vector<8x256xf32>
    %142 = arith.select %140, %137, %141 : vector<8x256xi1>, vector<8x256xf32>
    %143 = vector.broadcast %138 : vector<8x1xf32> to vector<8x256xf32>
    %144 = arith.mulf %142, %143 : vector<8x256xf32>
    %145 = arith.addf %136, %144 : vector<8x256xf32>
    %146 = vector.extract_strided_slice %17 {offsets = [0, 20], sizes = [8, 256], strides = [1, 1]} : vector<8x324xf32> to vector<8x256xf32>
    %147 = vector.extract_strided_slice %71 {offsets = [0, 9], sizes = [8, 1], strides = [1, 1]} : vector<8x25xf32> to vector<8x1xf32>
    %cst_37 = arith.constant 0.000000e+00 : f32
    %148 = vector.shape_cast %70 : vector<1x256xi1> to vector<1x256xi1>
    %149 = vector.broadcast %148 : vector<1x256xi1> to vector<8x256xi1>
    %150 = vector.broadcast %cst_37 : f32 to vector<8x256xf32>
    %151 = arith.select %149, %146, %150 : vector<8x256xi1>, vector<8x256xf32>
    %152 = vector.broadcast %147 : vector<8x1xf32> to vector<8x256xf32>
    %153 = arith.mulf %151, %152 : vector<8x256xf32>
    %154 = arith.addf %145, %153 : vector<8x256xf32>
    %155 = vector.extract_strided_slice %17 {offsets = [0, 32], sizes = [8, 256], strides = [1, 1]} : vector<8x324xf32> to vector<8x256xf32>
    %156 = vector.extract_strided_slice %71 {offsets = [0, 10], sizes = [8, 1], strides = [1, 1]} : vector<8x25xf32> to vector<8x1xf32>
    %cst_38 = arith.constant 0.000000e+00 : f32
    %157 = vector.shape_cast %43 : vector<1x256xi1> to vector<1x256xi1>
    %158 = vector.broadcast %157 : vector<1x256xi1> to vector<8x256xi1>
    %159 = vector.broadcast %cst_38 : f32 to vector<8x256xf32>
    %160 = arith.select %158, %155, %159 : vector<8x256xi1>, vector<8x256xf32>
    %161 = vector.broadcast %156 : vector<8x1xf32> to vector<8x256xf32>
    %162 = arith.mulf %160, %161 : vector<8x256xf32>
    %163 = arith.addf %154, %162 : vector<8x256xf32>
    %164 = vector.extract_strided_slice %17 {offsets = [0, 33], sizes = [8, 256], strides = [1, 1]} : vector<8x324xf32> to vector<8x256xf32>
    %165 = vector.extract_strided_slice %71 {offsets = [0, 11], sizes = [8, 1], strides = [1, 1]} : vector<8x25xf32> to vector<8x1xf32>
    %cst_39 = arith.constant 0.000000e+00 : f32
    %166 = vector.shape_cast %52 : vector<1x256xi1> to vector<1x256xi1>
    %167 = vector.broadcast %166 : vector<1x256xi1> to vector<8x256xi1>
    %168 = vector.broadcast %cst_39 : f32 to vector<8x256xf32>
    %169 = arith.select %167, %164, %168 : vector<8x256xi1>, vector<8x256xf32>
    %170 = vector.broadcast %165 : vector<8x1xf32> to vector<8x256xf32>
    %171 = arith.mulf %169, %170 : vector<8x256xf32>
    %172 = arith.addf %163, %171 : vector<8x256xf32>
    %173 = vector.extract_strided_slice %17 {offsets = [0, 34], sizes = [8, 256], strides = [1, 1]} : vector<8x324xf32> to vector<8x256xf32>
    %174 = vector.extract_strided_slice %71 {offsets = [0, 12], sizes = [8, 1], strides = [1, 1]} : vector<8x25xf32> to vector<8x1xf32>
    %175 = vector.broadcast %174 : vector<8x1xf32> to vector<8x256xf32>
    %176 = arith.mulf %173, %175 : vector<8x256xf32>
    %177 = arith.addf %172, %176 : vector<8x256xf32>
    %178 = vector.extract_strided_slice %17 {offsets = [0, 35], sizes = [8, 256], strides = [1, 1]} : vector<8x324xf32> to vector<8x256xf32>
    %179 = vector.extract_strided_slice %71 {offsets = [0, 13], sizes = [8, 1], strides = [1, 1]} : vector<8x25xf32> to vector<8x1xf32>
    %cst_40 = arith.constant 0.000000e+00 : f32
    %180 = vector.shape_cast %61 : vector<1x256xi1> to vector<1x256xi1>
    %181 = vector.broadcast %180 : vector<1x256xi1> to vector<8x256xi1>
    %182 = vector.broadcast %cst_40 : f32 to vector<8x256xf32>
    %183 = arith.select %181, %178, %182 : vector<8x256xi1>, vector<8x256xf32>
    %184 = vector.broadcast %179 : vector<8x1xf32> to vector<8x256xf32>
    %185 = arith.mulf %183, %184 : vector<8x256xf32>
    %186 = arith.addf %177, %185 : vector<8x256xf32>
    %187 = vector.extract_strided_slice %17 {offsets = [0, 36], sizes = [8, 256], strides = [1, 1]} : vector<8x324xf32> to vector<8x256xf32>
    %188 = vector.extract_strided_slice %71 {offsets = [0, 14], sizes = [8, 1], strides = [1, 1]} : vector<8x25xf32> to vector<8x1xf32>
    %cst_41 = arith.constant 0.000000e+00 : f32
    %189 = vector.shape_cast %70 : vector<1x256xi1> to vector<1x256xi1>
    %190 = vector.broadcast %189 : vector<1x256xi1> to vector<8x256xi1>
    %191 = vector.broadcast %cst_41 : f32 to vector<8x256xf32>
    %192 = arith.select %190, %187, %191 : vector<8x256xi1>, vector<8x256xf32>
    %193 = vector.broadcast %188 : vector<8x1xf32> to vector<8x256xf32>
    %194 = arith.mulf %192, %193 : vector<8x256xf32>
    %195 = arith.addf %186, %194 : vector<8x256xf32>
    %196 = vector.extract_strided_slice %17 {offsets = [0, 48], sizes = [8, 256], strides = [1, 1]} : vector<8x324xf32> to vector<8x256xf32>
    %197 = vector.extract_strided_slice %71 {offsets = [0, 15], sizes = [8, 1], strides = [1, 1]} : vector<8x25xf32> to vector<8x1xf32>
    %cst_42 = arith.constant 0.000000e+00 : f32
    %198 = vector.shape_cast %43 : vector<1x256xi1> to vector<1x256xi1>
    %199 = vector.broadcast %198 : vector<1x256xi1> to vector<8x256xi1>
    %200 = vector.broadcast %cst_42 : f32 to vector<8x256xf32>
    %201 = arith.select %199, %196, %200 : vector<8x256xi1>, vector<8x256xf32>
    %202 = vector.broadcast %197 : vector<8x1xf32> to vector<8x256xf32>
    %203 = arith.mulf %201, %202 : vector<8x256xf32>
    %204 = arith.addf %195, %203 : vector<8x256xf32>
    %205 = vector.extract_strided_slice %17 {offsets = [0, 49], sizes = [8, 256], strides = [1, 1]} : vector<8x324xf32> to vector<8x256xf32>
    %206 = vector.extract_strided_slice %71 {offsets = [0, 16], sizes = [8, 1], strides = [1, 1]} : vector<8x25xf32> to vector<8x1xf32>
    %cst_43 = arith.constant 0.000000e+00 : f32
    %207 = vector.shape_cast %52 : vector<1x256xi1> to vector<1x256xi1>
    %208 = vector.broadcast %207 : vector<1x256xi1> to vector<8x256xi1>
    %209 = vector.broadcast %cst_43 : f32 to vector<8x256xf32>
    %210 = arith.select %208, %205, %209 : vector<8x256xi1>, vector<8x256xf32>
    %211 = vector.broadcast %206 : vector<8x1xf32> to vector<8x256xf32>
    %212 = arith.mulf %210, %211 : vector<8x256xf32>
    %213 = arith.addf %204, %212 : vector<8x256xf32>
    %214 = vector.extract_strided_slice %17 {offsets = [0, 50], sizes = [8, 256], strides = [1, 1]} : vector<8x324xf32> to vector<8x256xf32>
    %215 = vector.extract_strided_slice %71 {offsets = [0, 17], sizes = [8, 1], strides = [1, 1]} : vector<8x25xf32> to vector<8x1xf32>
    %216 = vector.broadcast %215 : vector<8x1xf32> to vector<8x256xf32>
    %217 = arith.mulf %214, %216 : vector<8x256xf32>
    %218 = arith.addf %213, %217 : vector<8x256xf32>
    %219 = vector.extract_strided_slice %17 {offsets = [0, 51], sizes = [8, 256], strides = [1, 1]} : vector<8x324xf32> to vector<8x256xf32>
    %220 = vector.extract_strided_slice %71 {offsets = [0, 18], sizes = [8, 1], strides = [1, 1]} : vector<8x25xf32> to vector<8x1xf32>
    %cst_44 = arith.constant 0.000000e+00 : f32
    %221 = vector.shape_cast %61 : vector<1x256xi1> to vector<1x256xi1>
    %222 = vector.broadcast %221 : vector<1x256xi1> to vector<8x256xi1>
    %223 = vector.broadcast %cst_44 : f32 to vector<8x256xf32>
    %224 = arith.select %222, %219, %223 : vector<8x256xi1>, vector<8x256xf32>
    %225 = vector.broadcast %220 : vector<8x1xf32> to vector<8x256xf32>
    %226 = arith.mulf %224, %225 : vector<8x256xf32>
    %227 = arith.addf %218, %226 : vector<8x256xf32>
    %228 = vector.extract_strided_slice %17 {offsets = [0, 52], sizes = [8, 256], strides = [1, 1]} : vector<8x324xf32> to vector<8x256xf32>
    %229 = vector.extract_strided_slice %71 {offsets = [0, 19], sizes = [8, 1], strides = [1, 1]} : vector<8x25xf32> to vector<8x1xf32>
    %cst_45 = arith.constant 0.000000e+00 : f32
    %230 = vector.shape_cast %70 : vector<1x256xi1> to vector<1x256xi1>
    %231 = vector.broadcast %230 : vector<1x256xi1> to vector<8x256xi1>
    %232 = vector.broadcast %cst_45 : f32 to vector<8x256xf32>
    %233 = arith.select %231, %228, %232 : vector<8x256xi1>, vector<8x256xf32>
    %234 = vector.broadcast %229 : vector<8x1xf32> to vector<8x256xf32>
    %235 = arith.mulf %233, %234 : vector<8x256xf32>
    %236 = arith.addf %227, %235 : vector<8x256xf32>
    %237 = vector.extract_strided_slice %17 {offsets = [0, 64], sizes = [8, 256], strides = [1, 1]} : vector<8x324xf32> to vector<8x256xf32>
    %238 = vector.extract_strided_slice %71 {offsets = [0, 20], sizes = [8, 1], strides = [1, 1]} : vector<8x25xf32> to vector<8x1xf32>
    %cst_46 = arith.constant 0.000000e+00 : f32
    %239 = vector.shape_cast %43 : vector<1x256xi1> to vector<1x256xi1>
    %240 = vector.broadcast %239 : vector<1x256xi1> to vector<8x256xi1>
    %241 = vector.broadcast %cst_46 : f32 to vector<8x256xf32>
    %242 = arith.select %240, %237, %241 : vector<8x256xi1>, vector<8x256xf32>
    %243 = vector.broadcast %238 : vector<8x1xf32> to vector<8x256xf32>
    %244 = arith.mulf %242, %243 : vector<8x256xf32>
    %245 = arith.addf %236, %244 : vector<8x256xf32>
    %246 = vector.extract_strided_slice %17 {offsets = [0, 65], sizes = [8, 256], strides = [1, 1]} : vector<8x324xf32> to vector<8x256xf32>
    %247 = vector.extract_strided_slice %71 {offsets = [0, 21], sizes = [8, 1], strides = [1, 1]} : vector<8x25xf32> to vector<8x1xf32>
    %cst_47 = arith.constant 0.000000e+00 : f32
    %248 = vector.shape_cast %52 : vector<1x256xi1> to vector<1x256xi1>
    %249 = vector.broadcast %248 : vector<1x256xi1> to vector<8x256xi1>
    %250 = vector.broadcast %cst_47 : f32 to vector<8x256xf32>
    %251 = arith.select %249, %246, %250 : vector<8x256xi1>, vector<8x256xf32>
    %252 = vector.broadcast %247 : vector<8x1xf32> to vector<8x256xf32>
    %253 = arith.mulf %251, %252 : vector<8x256xf32>
    %254 = arith.addf %245, %253 : vector<8x256xf32>
    %255 = vector.extract_strided_slice %17 {offsets = [0, 66], sizes = [8, 256], strides = [1, 1]} : vector<8x324xf32> to vector<8x256xf32>
    %256 = vector.extract_strided_slice %71 {offsets = [0, 22], sizes = [8, 1], strides = [1, 1]} : vector<8x25xf32> to vector<8x1xf32>
    %257 = vector.broadcast %256 : vector<8x1xf32> to vector<8x256xf32>
    %258 = arith.mulf %255, %257 : vector<8x256xf32>
    %259 = arith.addf %254, %258 : vector<8x256xf32>
    %260 = vector.extract_strided_slice %17 {offsets = [0, 67], sizes = [8, 256], strides = [1, 1]} : vector<8x324xf32> to vector<8x256xf32>
    %261 = vector.extract_strided_slice %71 {offsets = [0, 23], sizes = [8, 1], strides = [1, 1]} : vector<8x25xf32> to vector<8x1xf32>
    %cst_48 = arith.constant 0.000000e+00 : f32
    %262 = vector.shape_cast %61 : vector<1x256xi1> to vector<1x256xi1>
    %263 = vector.broadcast %262 : vector<1x256xi1> to vector<8x256xi1>
    %264 = vector.broadcast %cst_48 : f32 to vector<8x256xf32>
    %265 = arith.select %263, %260, %264 : vector<8x256xi1>, vector<8x256xf32>
    %266 = vector.broadcast %261 : vector<8x1xf32> to vector<8x256xf32>
    %267 = arith.mulf %265, %266 : vector<8x256xf32>
    %268 = arith.addf %259, %267 : vector<8x256xf32>
    %269 = vector.extract_strided_slice %17 {offsets = [0, 68], sizes = [8, 256], strides = [1, 1]} : vector<8x324xf32> to vector<8x256xf32>
    %270 = vector.extract_strided_slice %71 {offsets = [0, 24], sizes = [8, 1], strides = [1, 1]} : vector<8x25xf32> to vector<8x1xf32>
    %cst_49 = arith.constant 0.000000e+00 : f32
    %271 = vector.shape_cast %70 : vector<1x256xi1> to vector<1x256xi1>
    %272 = vector.broadcast %271 : vector<1x256xi1> to vector<8x256xi1>
    %273 = vector.broadcast %cst_49 : f32 to vector<8x256xf32>
    %274 = arith.select %272, %269, %273 : vector<8x256xi1>, vector<8x256xf32>
    %275 = vector.broadcast %270 : vector<8x1xf32> to vector<8x256xf32>
    %276 = arith.mulf %274, %275 : vector<8x256xf32>
    %277 = arith.addf %268, %276 : vector<8x256xf32>
    %c0_50 = arith.constant 0 : index
    %c0_51 = arith.constant 0 : index
    %278 = vector.load %arg5[%c0_50, %c0_51] : memref<8x1xf32, #tpu.memory_space<vmem>>, vector<8x1xf32>
    %279 = vector.broadcast %278 : vector<8x1xf32> to vector<8x256xf32>
    %280 = arith.addf %277, %279 : vector<8x256xf32>
    %281 = arith.negf %280 : vector<8x256xf32>
    %282 = math.exp %281 : vector<8x256xf32>
    %cst_52 = arith.constant 1.000000e+00 : f32
    %283 = vector.broadcast %cst_52 : f32 to vector<8x256xf32>
    %284 = arith.addf %283, %282 : vector<8x256xf32>
    %285 = arith.divf %283, %284 : vector<8x256xf32>
    %286 = arith.mulf %280, %285 : vector<8x256xf32>
    %c0_53 = arith.constant 0 : index
    %c8 = arith.constant 8 : index
    %c0_54 = arith.constant 0 : index
    %287 = vector.load %arg6[%c0_53, %c8, %c0_54] : memref<1x16x256xf32, #tpu.memory_space<vmem>>, vector<1x8x256xf32>
    %288 = vector.shape_cast %287 : vector<1x8x256xf32> to vector<8x256xf32>
    %289 = vector.shape_cast %286 : vector<8x256xf32> to vector<1x8x256xf32>
    tpu.vector_store %arg6[%c0_53, %c8, %c0_54], %289 {strides = array<i32>} : memref<1x16x256xf32, #tpu.memory_space<vmem>>, vector<1x8x256xf32>,
    return
  }
  func.func @transform_0(%arg0: i32) -> (i32, i32, i32) {
    %c0_i32 = arith.constant 0 : i32
    %c0_i32_0 = arith.constant 0 : i32
    %c0_i32_1 = arith.constant 0 : i32
    return %arg0, %c0_i32, %c0_i32_0 : i32, i32, i32
  }
  func.func @transform_1(%arg0: i32) -> (i32, i32) {
    %c0_i32 = arith.constant 0 : i32
    %c0_i32_0 = arith.constant 0 : i32
    %c0_i32_1 = arith.constant 0 : i32
    return %c0_i32, %c0_i32_0 : i32, i32
  }
  func.func @transform_2(%arg0: i32) -> (i32, i32) {
    %c0_i32 = arith.constant 0 : i32
    %c0_i32_0 = arith.constant 0 : i32
    %c0_i32_1 = arith.constant 0 : i32
    return %c0_i32, %c0_i32_0 : i32, i32
  }
  func.func @transform_3(%arg0: i32) -> (i32, i32) {
    %c0_i32 = arith.constant 0 : i32
    %c0_i32_0 = arith.constant 0 : i32
    %c0_i32_1 = arith.constant 0 : i32
    return %c0_i32, %c0_i32_0 : i32, i32
  }
  func.func @transform_4(%arg0: i32) -> (i32, i32) {
    %c0_i32 = arith.constant 0 : i32
    %c0_i32_0 = arith.constant 0 : i32
    %c0_i32_1 = arith.constant 0 : i32
    return %c0_i32, %c0_i32_0 : i32, i32
  }
  func.func @transform_5(%arg0: i32) -> (i32, i32, i32) {
    %c0_i32 = arith.constant 0 : i32
    %c0_i32_0 = arith.constant 0 : i32
    %c0_i32_1 = arith.constant 0 : i32
    return %arg0, %c0_i32, %c0_i32_0 : i32, i32, i32
  }
}

</mosaic_0001>

<bundles_post_ra>
// kernel: ghostconv_pallas.1
= control target key start
LH: loop header
LB: loop body
LE: loop exit
PB: predicated region body
PF: predicated region fallthrough
CT: control target
= control target key end

     0   :  { %s1249_s18 = smov 0   ;;  %s1805_s0 = inlined_call_operand.vmem [shape: f32[2,8,256], index: 0, kind: input, shape index: {}]   ;;  %s1806_s1 = inlined_call_operand.vmem [shape: f32[8,8], index: 1, kind: input, shape index: {}]   ;;  %s1807_s2 = inlined_call_operand.vmem [shape: f32[8,1], index: 2, kind: input, shape index: {}]   ;;  %s1808_s3 = inlined_call_operand.vmem [shape: f32[8,25], index: 3, kind: input, shape index: {}]   ;;  %s1809_s4 = inlined_call_operand.vmem [shape: f32[8,1], index: 4, kind: input, shape index: {}]   ;;  %s1810_s5 = inlined_call_operand.vmem [shape: f32[2,16,256], index: 5, kind: output, shape index: {}]  }
   0x1 LB: > { %s1041_s19 = sadd.s32 4294967295, %s1167_s18   ;;  %p1045_p0 = scmp.ge.s32.totalorder %s1167_s18, 1  ;;  %s1167_s18 = sphi %s1249_s18, %s15_s18  }
   0x2   : > { %p187_p1 = scmp.lt.s32.totalorder %s1167_s18, 3 }
   0x4   : > { %p188_p2 = pnand %p1045_p0, %p187_p1 }
   0x6   : > { %191 = sbr.rel (%p188_p2) target bundleno = 703 (0x2bf), region = 40 }
   0xb   : > { %p215_p3 = scmp.lt.s32.totalorder %s1041_s19, 1  ;;  %v228_v0 = vld [vmem:[%s1807_s2] sm:$0xff]  ;;  %v1169_v1 = vmov 0   ;;  %vm234_vm0 = vcmask 64512   ;;  %v1170_v6 = vmov 3   ;;  %v1171_v7 = vmov 2  }
   0xc   : > { %1118 = vset.pattern.permute.xlu0 %v1169_v1  ;;  %v1264_v2 = vld [vmem:[%s1808_s3] sm:$0xff]  ;;  %1119 = vset.pattern.permute.xlu1 %v1169_v1  ;;  %v1172_v8 = vmov 5   ;;  %v1173_v9 = vmov 7   ;;  %v1174_v10 = vmov 9   ;;  %v1175_v11 = vmov 11   ;;  %s1189_s9 = smov 34  }
   0xd   : > { %s1842_s19 = smov (!%p215_p3, %s1041_s19), 1  ;;  %231 = vperm.xlu0 %1118, %v228_v0   ;;  %401 = vperm.xlu1 %1119, %v1264_v2   ;;  %v227_v3 = vld [vmem:[%s1806_s1] sm:$0xff]  ;;  %v1176_v12 = vmov 13   ;;  %v1177_v13 = vmov 4   ;;  %v1178_v14 = vmov 15   ;;  %v1179_v15 = vmov 6  }
   0xe   : > { %s1058_s24 = sshll.u32 %s1842_s19, 4  ;;  %1121 = vset.pattern.permute.xlu2 %v1171_v7  ;;  %v1180_v16 = vmov 1   ;;  %v1181_v17 = vmov 17   ;;  %v1182_v18 = vmov 8   ;;  %v1183_v19 = vmov 12   ;;  %s1059_s30 = sshll.u32 %s1842_s19, 5 }
   0xf   : > { %s219_s27 = scalar_lea.vmem %s1805_s0, %s1058_s24  ;;  %436 = vperm.xlu2 %1121, %v1264_v2   ;;  %v1184_v20 = vmov 18   ;;  %v1185_v22 = vmov 10   ;;  %v1186_v29 = vmov 14   ;;  %v1187_v34 = vmov 16   ;;  %s1300_s8 = scalar_lea.vmem %s1810_s5, %s1059_s30 }
  0x10   : > { %v225_v4 = vld [vmem:[%s219_s27] sm:$0xff]  ;;  %v226_v5 = vld [vmem:[%s219_s27 + $0x8] sm:$0xff]  ;;  %v1188_v47 = vmov 22   ;;  %v1190_v61 = vmov 19   ;;  %vm326_vm9 = vcmask 277504   ;;  %s1191_s10 = smov 127  }
  0x11   : > { %253 = vmatpush.msra.mxu0 %v225_v4  ;;  %273 = vmatpush.msra.mxu1 %v226_v5  ;;  %s1192_s11 = smov 125   ;;  %s1193_s12 = smov 124   ;;  %vm420_vm11 = vcmask 1039360   ;;  %vm468_vm14 = vcmask 1022976  }
  0x12   : > { %1050 = vmatmul.msk.f32.vlgmr.msra.gmra.mxu0 %vm234_vm0, %v227_v3  ;;  %1051 = vmatmul.msk.f32.vlgmr.msra.gmra.mxu1 %vm234_vm0, %v227_v3  ;;  %s1194_s13 = smov 112   ;;  %s1195_s14 = smov 109   ;;  %vm493_vm0 = vcmask 1014784  }
  0x13   : > { %s1196_s15 = smov 108   ;;  %s1197_s16 = smov 111  }
  0x14   : > { %s1198_s17 = smov 95   ;;  %s1199_s19 = smov 93  }
  0x15   : > { %1122 = vset.pattern.permute.xlu0 %v1170_v6  ;;  %1120 = vset.pattern.permute.xlu1 %v1180_v16  ;;  %s1201_s20 = smov 80   ;;  %s1202_s21 = smov 96  }
  0x16   : > { %476 = vperm.xlu0 %1122, %v1264_v2   ;;  %428 = vperm.xlu1 %1120, %v1264_v2   ;;  %s1203_s22 = smov 77   ;;  %s1204_s23 = smov 64  }
  0x17   : > { %1123 = vset.pattern.permute.xlu2 %v1177_v13  ;;  %s1205_s24 = smov 126   ;;  %s1206_s25 = smov 92  }
  0x18   : > { %501 = vperm.xlu2 %1123, %v1264_v2   ;;  %s1207_s26 = smov 61   ;;  %s1208_s27 = smov 79  }
  0x19   : > { %s1209_s28 = smov 62   ;;  %s1211_s29 = smov 76  }
  0x1a   : > { %s1212_s30 = smov 63   ;;  %s1214_s6 = smov 110  }
  0x1b   : > { %s1215_s7 = smov 94  }
  0x1e   : > { %1124 = vset.pattern.permute.xlu0 %v1172_v8  ;;  %1131 = vset.pattern.permute.xlu1 %v1183_v19  ;;  %v1200_v19 = vmov 20  }
  0x1f   : > { %522 = vperm.xlu0 %1124, %v1264_v2   ;;  %658 = vperm.xlu1 %1131, %v1264_v2  }
  0x20   : > { %1125 = vset.pattern.permute.xlu2 %v1179_v15 }
  0x21   : > { %543 = vperm.xlu2 %1125, %v1264_v2  }
  0x27   : > { %1126 = vset.pattern.permute.xlu0 %v1173_v9 }
  0x28   : > { %551 = vperm.xlu0 %1126, %v1264_v2  }
  0x29   : > { %1127 = vset.pattern.permute.xlu2 %v1182_v18 }
  0x2a   : > { %587 = vperm.xlu2 %1127, %v1264_v2  }
  0x30   : > { %1128 = vset.pattern.permute.xlu0 %v1174_v10 }
  0x31   : > { %608 = vperm.xlu0 %1128, %v1264_v2  }
  0x32   : > { %1129 = vset.pattern.permute.xlu2 %v1185_v22 }
  0x33   : > { %629 = vperm.xlu2 %1129, %v1264_v2  }
  0x39   : > { %1130 = vset.pattern.permute.xlu0 %v1175_v11 }
  0x3a   : > { %650 = vperm.xlu0 %1130, %v1264_v2  }
  0x3b   : > { %1133 = vset.pattern.permute.xlu2 %v1186_v29 }
  0x3c   : > { %715 = vperm.xlu2 %1133, %v1264_v2  }
  0x42   : > { %1132 = vset.pattern.permute.xlu0 %v1176_v12 }
  0x43   : > { %694 = vperm.xlu0 %1132, %v1264_v2  }
  0x44   : > { %1135 = vset.pattern.permute.xlu2 %v1187_v34 }
  0x45   : > { %757 = vperm.xlu2 %1135, %v1264_v2  }
  0x4b   : > { %1134 = vset.pattern.permute.xlu0 %v1178_v14 }
  0x4c   : > { %736 = vperm.xlu0 %1134, %v1264_v2  }
  0x4d   : > { %1137 = vset.pattern.permute.xlu2 %v1188_v47 }
  0x4e   : > { %872 = vperm.xlu2 %1137, %v1264_v2  }
  0x54   : > { %1136 = vset.pattern.permute.xlu0 %v1181_v17 }
  0x55   : > { %765 = vperm.xlu0 %1136, %v1264_v2  }
  0x56   : > { %1139 = vset.pattern.permute.xlu2 %v1190_v61 }
  0x57   : > { %822 = vperm.xlu2 %1139, %v1264_v2  }
  0x5d   : > { %1138 = vset.pattern.permute.xlu0 %v1184_v20 }
  0x5e   : > { %801 = vperm.xlu0 %1138, %v1264_v2  }
  0x66   : > { %1140 = vset.pattern.permute.xlu0 %v1200_v19 }
  0x69   : > { %v1338_v14 = vpop.permute.xlu2 %436 }
  0x72   : > { %v1343_v15 = vpop.permute.xlu2 %501 }
  0x7b   : > { %v1348_v16 = vpop.permute.xlu2 %543 }
  0x7f   : > { %v232_v21 = vpop.permute.xlu0 %231  ;;  %v1319_v4 = vpop.permute.xlu1 %401 }
  0x84   : > { %v1353_v17 = vpop.permute.xlu2 %587 }
  0x88   : > { %v1304_v58 = vpop.permute.xlu0 %476  ;;  %v1323_v6 = vpop.permute.xlu1 %428 }
  0x8d   : > { %v1362_v18 = vpop.permute.xlu2 %629 }
  0x8f   : > { %v255_v23 = vpop.f32.mrf.mxu0  ;;  %v275_v24 = vpop.f32.mrf.mxu1 }
  0x90   : > { %v256_v25 = vadd.f32 %v255_v23, %v232_v21  ;;  %v276_v26 = vadd.f32 %v275_v24, %v232_v21 }
  0x91   : > { %v1306_v59 = vpop.permute.xlu0 %522  ;;  %v1327_v8 = vpop.permute.xlu1 %658 }
  0x92   : > { %v1052_v27 = vmul.f32 -1.442695, %v256_v25  ;;  %v1053_v28 = vmul.f32 -1.442695, %v276_v26 }
  0x94   : > { %1145 = vpow2.f32 %v1052_v27 }
  0x95   : > { %1147 = vpow2.f32 %v1053_v28 }
  0x96   : > { %v1368_v20 = vpop.permute.xlu2 %715 }
  0x9a   : > { %v1146_v30 = vpop.eup %1145  ;;  %v1308_v60 = vpop.permute.xlu0 %551 }
  0x9b   : > { %v1148_v31 = vpop.eup %1147  ;;  %v284_v32 = vadd.f32 1.0, %v1146_v30 }
  0x9c   : > { %v285_v33 = vadd.f32 1.0, %v1148_v31 }
  0x9d   : > { %1149 = vrcp.f32 %v284_v32  ;;  %v297_v40 = vand.u32 2147483648, %v284_v32  ;;  %v295_v43 = vand.u32 2147483647, %v284_v32  ;;  %vm291_vm3 = vweird.f32 %v284_v32 }
  0x9e   : > { %1151 = vrcp.f32 %v285_v33  ;;  %v312_v44 = vand.u32 2147483648, %v285_v33  ;;  %v310_v46 = vand.u32 2147483647, %v285_v33  ;;  %vm306_vm5 = vweird.f32 %v285_v33 }
  0x9f   : > { %v298_v49 = vor.u32 1.1754944e-38, %v297_v40  ;;  %vm296_vm6 = vcmp.eq.f32.partialorder %v295_v43, 8.507059e+37  ;;  %v1374_v21 = vpop.permute.xlu2 %757 }
  0xa0   : > { %v313_v52 = vor.u32 1.1754944e-38, %v312_v44  ;;  %vm311_vm8 = vcmp.eq.f32.partialorder %v310_v46, 8.507059e+37  ;;  %v1210_v44 = vmov 21  }
  0xa1   : > { %1141 = vset.pattern.permute.xlu2 %v1210_v44 }
  0xa3   : > { %v1150_v35 = vpop.eup %1149  ;;  %v1311_v62 = vpop.permute.xlu0 %608 }
  0xa4   : > { %v1152_v36 = vpop.eup %1151  ;;  %v287_v37 = vmul.f32 %v1150_v35, %v284_v32  ;;  %vm292_vm1 = vweird.f32 %v1150_v35 }
  0xa5   : > { %v302_v38 = vmul.f32 %v1152_v36, %v285_v33  ;;  %vm307_vm2 = vweird.f32 %v1152_v36  ;;  %vm293_vm4 = vmor %vm291_vm3, %vm292_vm1  ;;  %vm514_vm1 = vcmask 916480   ;;  %vm535_vm3 = vcmask 908288  }
  0xa6   : > { %v288_v39 = vsub.f32 1.0, %v287_v37  ;;  %vm308_vm7 = vmor %vm306_vm5, %vm307_vm2  ;;  %vm579_vm2 = vcmask 891904   ;;  %vm621_vm5 = vcmask 785408  }
  0xa7   : > { %v303_v41 = vsub.f32 1.0, %v302_v38 }
  0xa8   : > { %v289_v42 = vmul.f32 %v1150_v35, %v288_v39  ;;  %v1380_v22 = vpop.permute.xlu2 %872 }
  0xa9   : > { %v304_v45 = vmul.f32 %v1152_v36, %v303_v41 }
  0xaa   : > { %v290_v48 = vadd.f32 %v1150_v35, %v289_v42 }
  0xab   : > { %v305_v50 = vadd.f32 %v1152_v36, %v304_v45 }
  0xac   : > { %v294_v51 = vsel %vm293_vm4, %v1150_v35, %v290_v48  ;;  %v1313_v63 = vpop.permute.xlu0 %650  ;;  %vm600_vm4 = vcmask 883712  }
  0xad   : > { %v299_v53 = vsel %vm296_vm6, %v298_v49, %v294_v51  ;;  %v309_v54 = vsel %vm308_vm7, %v1152_v36, %v305_v50  ;;  %vm642_vm6 = vcmask 777216   ;;  %vm686_vm7 = vcmask 760832  }
  0xae   : > { %v316_v55 = vmul.f32 %v299_v53, %v256_v25  ;;  %v314_v56 = vsel %vm311_vm8, %v313_v52, %v309_v54  ;;  %v333_v25 = vlaneseq  ;;  %vm707_vm8 = vcmask 752640  }
  0xaf   : > { %v317_v57 = vmul.f32 %v314_v56, %v276_v26 }
  0xb0   : > { %318 = vst [vmem:[%s1300_s8] sm:$0xff] %v316_v55  ;;  %322 = vrot.lane.b32.xlu0 %v316_v55, %s1189_s9  ;;  %v334_v26 = vand.u32 127, %v333_v25 }
  0xb1   : > { %319 = vst [vmem:[%s1300_s8 + $0x8] sm:$0xff] %v317_v57  ;;  %324 = vrot.lane.b32.xlu1 %v317_v57, %s1189_s9  ;;  %v1391_v24 = vpop.permute.xlu2 %822  ;;  %s1216_s9 = smov 78  }
  0xb2   : > { %1816 = vst [vmem:[#allocation3_spill] sm:$0xff] %v1391_v24  ;;  %v1396_v27 = vand.u32 15, %v334_v26  ;;  %v335_v35 = vadd.s32 128, %v334_v26 }
  0xb4   : > { %v1403_v29 = vadd.s32 4294967294, %v1396_v27  ;;  %v1406_v30 = vadd.s32 4294967295, %v1396_v27  ;;  %v1429_v40 = vand.u32 15, %v335_v35  ;;  %v1213_v35 = vmov 23  }
  0xb5   : > { %v1315_v0 = vpop.permute.xlu0 %694 }
  0xb6   : > { %vm362_vm10 = vcmp.ge.s32.totalorder %v1403_v29, 0  ;;  %vm370_vm12 = vcmp.ge.s32.totalorder %v1406_v30, 0  ;;  %v1434_v42 = vadd.s32 4294967294, %v1429_v40  ;;  %v1437_v43 = vadd.s32 4294967295, %v1429_v40 }
  0xb8   : > { %vm363_vm13 = vcmp.ge.s32.totalorder %v1434_v42, 0  ;;  %vm371_vm15 = vcmp.ge.s32.totalorder %v1437_v43, 0 }
  0xbe   : > { %v1317_v3 = vpop.permute.xlu0 %736 }
  0xc7   : > { %v1321_v5 = vpop.permute.xlu0 %765 }
  0xd0   : > { %v1325_v7 = vpop.permute.xlu0 %801 }
  0xd1   : > { %1815 = vst [vmem:[#allocation2_spill] sm:$0xff] %v1325_v7 }
 0x122   : > { %v323_v9 = vpop.permute.xlu0 %322 }
 0x123   : > { %v325_v10 = vpop.permute.xlu1 %324  ;;  %v1329_v11 = vsel %vm326_vm9, 0.0, %v323_v9 }
 0x124   : > { %v1331_v12 = vsel %vm326_vm9, %v325_v10, 0.0  ;;  %v1333_v13 = vsel %vm326_vm9, %v323_v9, %v325_v10  ;;  %414 = vrot.lane.b32.xlu2 %v1329_v11, %s1191_s10  ;;  %v439_v23 = vmul.f32 %v1338_v14, %v1329_v11  ;;  %v397_v32 = vsel %vm362_vm10, %v1329_v11, 0.0 }
 0x125   : > { %418 = vrot.lane.b32.xlu0 %v1331_v12, %s1191_s10  ;;  %464 = vrot.lane.b32.xlu1 %v1333_v13, %s1192_s11  ;;  %v404_v37 = vmul.f32 %v1319_v4, %v397_v32  ;;  %v875_v38 = vmul.f32 %v1380_v22, %v1329_v11  ;;  %v398_v48 = vsel %vm363_vm13, %v1333_v13, 0.0  ;;  %vm728_vm9 = vcmask 654336  }
 0x126   : > { %v405_v53 = vmul.f32 %v1319_v4, %v398_v48 }
 0x12c   : > { %416 = vrot.lane.b32.xlu2 %v1333_v13, %s1191_s10  ;;  %s1217_s10 = smov 60  }
 0x12d   : > { %462 = vrot.lane.b32.xlu0 %v1329_v11, %s1192_s11  ;;  %487 = vrot.lane.b32.xlu1 %v1329_v11, %s1193_s12 }
 0x134   : > { %466 = vrot.lane.b32.xlu2 %v1331_v12, %s1192_s11 }
 0x135   : > { %508 = vrot.lane.b32.xlu0 %v1329_v11, %s1194_s13  ;;  %491 = vrot.lane.b32.xlu1 %v1331_v12, %s1193_s12 }
 0x13c   : > { %489 = vrot.lane.b32.xlu2 %v1333_v13, %s1193_s12 }
 0x13d   : > { %575 = vrot.lane.b32.xlu0 %v1333_v13, %s1195_s14  ;;  %510 = vrot.lane.b32.xlu1 %v1333_v13, %s1194_s13 }
 0x144   : > { %512 = vrot.lane.b32.xlu2 %v1331_v12, %s1194_s13 }
 0x145   : > { %594 = vrot.lane.b32.xlu0 %v1329_v11, %s1196_s15  ;;  %529 = vrot.lane.b32.xlu1 %v1329_v11, %s1197_s16 }
 0x14c   : > { %531 = vrot.lane.b32.xlu2 %v1333_v13, %s1197_s16 }
 0x14d   : > { %636 = vrot.lane.b32.xlu0 %v1329_v11, %s1198_s17  ;;  %533 = vrot.lane.b32.xlu1 %v1331_v12, %s1197_s16 }
 0x154   : > { %573 = vrot.lane.b32.xlu2 %v1329_v11, %s1195_s14 }
 0x155   : > { %680 = vrot.lane.b32.xlu0 %v1329_v11, %s1199_s19  ;;  %577 = vrot.lane.b32.xlu1 %v1331_v12, %s1195_s14 }
 0x15c   : > { %598 = vrot.lane.b32.xlu2 %v1331_v12, %s1196_s15 }
 0x15d   : > { %722 = vrot.lane.b32.xlu0 %v1329_v11, %s1201_s20  ;;  %596 = vrot.lane.b32.xlu1 %v1333_v13, %s1196_s15 }
 0x164   : > { %617 = vrot.lane.b32.xlu2 %v1333_v13, %s1202_s21 }
 0x165   : > { %787 = vrot.lane.b32.xlu0 %v1329_v11, %s1203_s22  ;;  %615 = vrot.lane.b32.xlu1 %v1329_v11, %s1202_s21 }
 0x16c   : > { %640 = vrot.lane.b32.xlu2 %v1331_v12, %s1198_s17 }
 0x16d   : > { %829 = vrot.lane.b32.xlu0 %v1329_v11, %s1204_s23  ;;  %619 = vrot.lane.b32.xlu1 %v1331_v12, %s1202_s21 }
 0x174   : > { %684 = vrot.lane.b32.xlu2 %v1331_v12, %s1199_s19 }
 0x175   : > { %445 = vrot.lane.b32.xlu0 %v439_v23, %s1205_s24  ;;  %638 = vrot.lane.b32.xlu1 %v1333_v13, %s1198_s17 }
 0x17c   : > { %703 = vrot.lane.b32.xlu2 %v1333_v13, %s1206_s25 }
 0x17d   : > { %843 = vperm.xlu0 %1140, %v1264_v2   ;;  %682 = vrot.lane.b32.xlu1 %v1333_v13, %s1199_s19 }
 0x17e   : > { %v415_v28 = vpop.permute.xlu2 %414 }
 0x184   : > { %726 = vrot.lane.b32.xlu2 %v1331_v12, %s1201_s20 }
 0x185   : > { %894 = vrot.lane.b32.xlu0 %v1329_v11, %s1207_s26  ;;  %701 = vrot.lane.b32.xlu1 %v1329_v11, %s1206_s25 }
 0x186   : > { %v417_v31 = vpop.permute.xlu2 %416  ;;  %1142 = vset.pattern.permute.xlu0 %v1213_v35  ;;  %v877_v35 = vmul.f32 %v1380_v22, %v1331_v12 }
 0x187   : > { %v421_v33 = vsel %vm420_vm11, %v415_v28, %v417_v31 }
 0x188   : > { %v425_v34 = vsel %vm370_vm12, %v421_v33, 0.0 }
 0x189   : > { %v431_v36 = vmul.f32 %v1323_v6, %v425_v34 }
 0x18b   : > { %v1425_v39 = vadd.f32 %v431_v36, %v404_v37 }
 0x18c   : > { %745 = vrot.lane.b32.xlu2 %v1333_v13, %s1208_s27 }
 0x18d   : > { %881 = vrot.lane.b32.xlu0 %v875_v38, %s1209_s28  ;;  %705 = vrot.lane.b32.xlu1 %v1331_v12, %s1206_s25  ;;  %v441_v38 = vmul.f32 %v1338_v14, %v1331_v12 }
 0x18e   : > { %v467_v41 = vpop.permute.xlu2 %466 }
 0x194   : > { %791 = vrot.lane.b32.xlu2 %v1331_v12, %s1203_s22 }
 0x195   : > { %724 = vrot.lane.b32.xlu1 %v1333_v13, %s1201_s20  ;;  %908 = vperm.xlu0 %1142, %v1264_v2  }
 0x196   : > { %v490_v45 = vpop.permute.xlu2 %489 }
 0x197   : > { %v465_v46 = vpop.permute.xlu1 %464  ;;  %v419_v47 = vpop.permute.xlu0 %418 }
 0x198   : > { %v1449_v49 = vsel %vm468_vm14, %v465_v46, %v467_v41  ;;  %v422_v50 = vsel %vm420_vm11, %v417_v31, %v419_v47  ;;  %vm749_vm11 = vcmask 646144  }
 0x199   : > { %v426_v51 = vsel %vm371_vm15, %v422_v50, 0.0 }
 0x19a   : > { %v432_v52 = vmul.f32 %v1323_v6, %v426_v51 }
 0x19c   : > { %810 = vrot.lane.b32.xlu2 %v1333_v13, %s1211_s29  ;;  %v1458_v54 = vadd.f32 %v432_v52, %v405_v53  ;;  %v663_v53 = vmul.f32 %v1327_v8, %v1331_v12 }
 0x19d   : > { %743 = vrot.lane.b32.xlu1 %v1329_v11, %s1208_s27  ;;  %1144 = vset.pattern.permute.xlu0 %v1169_v1  ;;  %v661_v1 = vmul.f32 %v1327_v8, %v1329_v11 }
 0x19e   : > { %v513_v55 = vpop.permute.xlu2 %512 }
 0x19f   : > { %v488_v56 = vpop.permute.xlu1 %487  ;;  %v463_v57 = vpop.permute.xlu0 %462 }
 0x1a0   : > { %v1462_v61 = vsel %vm493_vm0, %v488_v56, %v490_v45  ;;  %v1465_v9 = vsel %vm468_vm14, %v463_v57, %v465_v46  ;;  %v555_v46 = vmul.f32 %v1308_v60, %v1333_v13  ;;  %vm793_vm14 = vcmask 629760  }
 0x1a4   : > { %833 = vrot.lane.b32.xlu2 %v1331_v12, %s1204_s23 }
 0x1a5   : > { %747 = vrot.lane.b32.xlu1 %v1331_v12, %s1208_s27 }
 0x1a6   : > { %v532_v4 = vpop.permute.xlu2 %531 }
 0x1a7   : > { %v492_v6 = vpop.permute.xlu1 %491  ;;  %v509_v10 = vpop.permute.xlu0 %508 }
 0x1a8   : > { %v1471_v19 = vsel %vm493_vm0, %v490_v45, %v492_v6  ;;  %v440_v6 = vmul.f32 %v1338_v14, %v1333_v13  ;;  %vm814_vm0 = vcmask 621568  }
 0x1ac   : > { %852 = vrot.lane.b32.xlu2 %v1333_v13, %s1212_s30 }
 0x1ad   : > { %789 = vrot.lane.b32.xlu1 %v1333_v13, %s1203_s22 }
 0x1ae   : > { %v574_v23 = vpop.permute.xlu2 %573 }
 0x1af   : > { %v511_v25 = vpop.permute.xlu1 %510  ;;  %v576_v26 = vpop.permute.xlu0 %575 }
 0x1b0   : > { %v1477_v28 = vsel %vm514_vm1, %v509_v10, %v511_v25  ;;  %v1479_v31 = vsel %vm514_vm1, %v511_v25, %v513_v55  ;;  %v1482_v32 = vsel %vm579_vm2, %v574_v23, %v576_v26  ;;  %vm835_vm1 = vcmask 523264  }
 0x1b4   : > { %864 = vperm.xlu2 %1141, %v1264_v2  }
 0x1b5   : > { %808 = vrot.lane.b32.xlu1 %v1329_v11, %s1211_s29 }
 0x1b6   : > { %v599_v45 = vpop.permute.xlu2 %598 }
 0x1b7   : > { %v530_v33 = vpop.permute.xlu1 %529 }
 0x1b8   : > { %v1487_v34 = vsel %vm535_vm3, %v530_v33, %v532_v4 }
 0x1bc   : > { %898 = vrot.lane.b32.xlu2 %v1331_v12, %s1207_s26 }
 0x1bd   : > { %812 = vrot.lane.b32.xlu1 %v1331_v12, %s1211_s29 }
 0x1be   : > { %v618_v50 = vpop.permute.xlu2 %617 }
 0x1bf   : > { %v534_v36 = vpop.permute.xlu1 %533 }
 0x1c0   : > { %v1494_v37 = vsel %vm535_vm3, %v532_v4, %v534_v36  ;;  %v770_v4 = vmul.f32 %v1321_v5, %v1331_v12  ;;  %vm900_vm3 = vcmask 498688  }
 0x1c4   : > { %449 = vrot.lane.b32.xlu2 %v441_v38, %s1205_s24  ;;  %v556_v38 = vmul.f32 %v1308_v60, %v1331_v12 }
 0x1c5   : > { %831 = vrot.lane.b32.xlu1 %v1333_v13, %s1204_s23 }
 0x1c6   : > { %v641_v55 = vpop.permute.xlu2 %640 }
 0x1c7   : > { %v578_v41 = vpop.permute.xlu1 %577 }
 0x1c8   : > { %v1503_v44 = vsel %vm579_vm2, %v576_v26, %v578_v41  ;;  %v554_v26 = vmul.f32 %v1308_v60, %v1329_v11  ;;  %v936_v60 = vld [vmem:[%s1809_s4] sm:$0xff]  ;;  %vm856_vm2 = vcmask 515072  }
 0x1c9   : > { %939 = vperm.xlu0 %1144, %v936_v60  }
 0x1cc   : > { %562 = vrot.lane.b32.xlu2 %v555_v46, %s1214_s6  ;;  %v662_v46 = vmul.f32 %v1327_v8, %v1333_v13 }
 0x1cd   : > { %850 = vrot.lane.b32.xlu1 %v1329_v11, %s1212_s30 }
 0x1ce   : > { %v685_v23 = vpop.permute.xlu2 %684 }
 0x1cf   : > { %v1510_v47 = vpop.permute.xlu1 %596 }
 0x1d0   : > { %v1514_v48 = vsel %vm600_vm4, %v1510_v47, %v599_v45 }
 0x1d4   : > { %667 = vrot.lane.b32.xlu2 %v661_v1, %s1215_s7 }
 0x1d5   : > { %854 = vrot.lane.b32.xlu1 %v1331_v12, %s1212_s30 }
 0x1d6   : > { %v704_v36 = vpop.permute.xlu2 %703 }
 0x1d7   : > { %v616_v51 = vpop.permute.xlu1 %615 }
 0x1d8   : > { %v1521_v52 = vsel %vm621_vm5, %v616_v51, %v618_v50 }
 0x1dc   : > { %671 = vrot.lane.b32.xlu2 %v663_v53, %s1215_s7  ;;  %v768_v53 = vmul.f32 %v1321_v5, %v1329_v11 }
 0x1dd   : > { %896 = vrot.lane.b32.xlu1 %v1333_v13, %s1207_s26 }
 0x1de   : > { %v727_v1 = vpop.permute.xlu2 %726 }
 0x1df   : > { %v620_v56 = vpop.permute.xlu1 %619 }
 0x1e0   : > { %v1528_v57 = vsel %vm621_vm5, %v618_v50, %v620_v56 }
 0x1e4   : > { %778 = vrot.lane.b32.xlu2 %v770_v4, %s1216_s9  ;;  %v769_v4 = vmul.f32 %v1321_v5, %v1333_v13  ;;  %v876_v5 = vmul.f32 %v1380_v22, %v1333_v13 }
 0x1e5   : > { %447 = vrot.lane.b32.xlu1 %v440_v6, %s1205_s24  ;;  %v1218_v6 = vmov 24  }
 0x1e6   : > { %1143 = vset.pattern.permute.xlu2 %v1218_v6 }
 0x1e7   : > { %v1536_v10 = vpop.permute.xlu1 %638 }
 0x1e8   : > { %v1540_v25 = vsel %vm642_vm6, %v1536_v10, %v641_v55  ;;  %v746_v55 = vpop.permute.xlu2 %745 }
 0x1ec   : > { %917 = vrot.lane.b32.xlu2 %v1333_v13, %s1217_s10 }
 0x1ed   : > { %560 = vrot.lane.b32.xlu1 %v554_v26, %s1214_s6 }
 0x1ef   : > { %v1547_v14 = vpop.permute.xlu1 %682 }
 0x1f0   : > { %v1551_v33 = vsel %vm686_vm7, %v1547_v14, %v685_v23  ;;  %v792_v26 = vpop.permute.xlu2 %791 }
 0x1f4   : > { %885 = vrot.lane.b32.xlu2 %v877_v35, %s1209_s28 }
 0x1f5   : > { %564 = vrot.lane.b32.xlu1 %v556_v38, %s1214_s6 }
 0x1f7   : > { %v702_v41 = vpop.permute.xlu1 %701 }
 0x1f8   : > { %v1559_v45 = vsel %vm707_vm8, %v702_v41, %v704_v36  ;;  %v811_v41 = vpop.permute.xlu2 %810 }
 0x1fc   : > { %929 = vperm.xlu2 %1143, %v1264_v2  }
 0x1fd   : > { %669 = vrot.lane.b32.xlu1 %v662_v46, %s1215_s7  ;;  %v1590_v46 = vpop.permute.xlu0 %594 }
 0x1ff   : > { %v706_v50 = vpop.permute.xlu1 %705 }
 0x200   : > { %v1564_v51 = vsel %vm707_vm8, %v704_v36, %v706_v50  ;;  %v834_v50 = vpop.permute.xlu2 %833 }
 0x205   : > { %774 = vrot.lane.b32.xlu1 %v768_v53, %s1216_s9 }
 0x207   : > { %v1572_v56 = vpop.permute.xlu1 %724 }
 0x208   : > { %v1576_v8 = vsel %vm728_vm9, %v1572_v56, %v727_v1  ;;  %v853_v22 = vpop.permute.xlu2 %852 }
 0x20d   : > { %776 = vrot.lane.b32.xlu1 %v769_v4, %s1216_s9 }
 0x20f   : > { %v744_v23 = vpop.permute.xlu1 %743 }
 0x210   : > { %v1582_v35 = vsel %vm749_vm11, %v744_v23, %v746_v55  ;;  %v865_v23 = vpop.permute.xlu2 %864 }
 0x215   : > { %915 = vrot.lane.b32.xlu1 %v1329_v11, %s1217_s10  ;;  %v1599_v11 = vpop.permute.xlu0 %636 }
 0x217   : > { %v748_v36 = vpop.permute.xlu1 %747 }
 0x218   : > { %v1586_v38 = vsel %vm749_vm11, %v746_v55, %v748_v36  ;;  %v899_v24 = vpop.permute.xlu2 %898 }
 0x21d   : > { %883 = vrot.lane.b32.xlu1 %v876_v5, %s1209_s28  ;;  %v1605_v53 = vpop.permute.xlu0 %680 }
 0x21f   : > { %v1593_v2 = vpop.permute.xlu1 %789 }
 0x220   : > { %v1597_v1 = vsel %vm793_vm14, %v1593_v2, %v792_v26 }
 0x221   : > { %1817 = vst [vmem:[#allocation4_spill] sm:$0xff] %v1597_v1 }
 0x225   : > { %919 = vrot.lane.b32.xlu1 %v1331_v12, %s1217_s10  ;;  %v1615_v36 = vpop.permute.xlu0 %722 }
 0x227   : > { %v809_v60 = vpop.permute.xlu1 %808 }
 0x228   : > { %v1603_v13 = vsel %vm814_vm0, %v809_v60, %v811_v41 }
 0x229   : > { %1818 = vst [vmem:[#allocation5_spill] sm:$0xff] %v1603_v13 }
 0x22f   : > { %v813_v55 = vpop.permute.xlu1 %812 }
 0x230   : > { %v1607_v4 = vsel %vm814_vm0, %v811_v41, %v813_v55  ;;  %v1621_v41 = vpop.permute.xlu0 %787 }
 0x231   : > { %1819 = vst [vmem:[#allocation6_spill] sm:$0xff] %v1607_v4 }
 0x232   : > { %1823 = vst [vmem:[#allocation10_spill] sm:$0xff] %v1621_v41 }
 0x237   : > { %v1609_v6 = vpop.permute.xlu1 %831 }
 0x238   : > { %1820 = vst [vmem:[#allocation7_spill] sm:$0xff] %v1609_v6  ;;  %v1613_v26 = vsel %vm835_vm1, %v1609_v6, %v834_v50  ;;  %v1627_v6 = vpop.permute.xlu0 %829 }
 0x239   : > { %1821 = vst [vmem:[#allocation8_spill] sm:$0xff] %v1613_v26  ;;  %v450_v26 = vpop.permute.xlu2 %449 }
 0x23a   : > { %1825 = vst [vmem:[#allocation12_spill] sm:$0xff] %v1627_v6 }
 0x23f   : > { %v851_v12 = vpop.permute.xlu1 %850 }
 0x240   : > { %v857_v5 = vsel %vm856_vm2, %v851_v12, %v853_v22  ;;  %v1630_v12 = vadd.s32 1, %v1429_v40 }
 0x241   : > { %v861_v60 = vsel %vm370_vm12, %v857_v5, 0.0  ;;  %v1633_v5 = vadd.s32 1, %v1396_v27 }
 0x242   : > { %v1619_v7 = vmul.f32 %v865_v23, %v861_v60  ;;  %vm381_vm5 = vcmp.lt.s32.totalorder %v1630_v12, 16 }
 0x243   : > { %vm380_vm8 = vcmp.lt.s32.totalorder %v1633_v5, 16 }
 0x244   : > { %1822 = vst [vmem:[#allocation9_spill] sm:$0xff] %v1619_v7  ;;  %v1638_v7 = vadd.s32 2, %v1396_v27  ;;  %v474_v27 = vsel %vm381_vm5, %v1449_v49, 0.0 }
 0x245   : > { %v480_v6 = vmul.f32 %v1304_v58, %v474_v27 }
 0x246   : > { %vm388_vm11 = vcmp.lt.s32.totalorder %v1638_v7, 16 }
 0x247   : > { %v855_v55 = vpop.permute.xlu1 %854 }
 0x248   : > { %v858_v4 = vsel %vm856_vm2, %v853_v22, %v855_v55  ;;  %v1641_v22 = vadd.s32 2, %v1429_v40  ;;  %vm451_vm2 = vcmask 1031168   ;;  %v473_v40 = vsel %vm380_vm8, %v1465_v9, 0.0  ;;  %v446_v55 = vpop.permute.xlu0 %445 }
 0x249   : > { %v862_v13 = vsel %vm371_vm15, %v858_v4, 0.0  ;;  %v563_v4 = vpop.permute.xlu2 %562  ;;  %v479_v49 = vmul.f32 %v1304_v58, %v473_v40  ;;  %v540_v58 = vsel %vm370_vm12, %v1487_v34, 0.0  ;;  %v601_v34 = vsel %vm600_vm4, %v1590_v46, %v1510_v47 }
 0x24a   : > { %v1625_v50 = vmul.f32 %v865_v23, %v862_v13  ;;  %vm389_vm0 = vcmp.lt.s32.totalorder %v1641_v22, 16  ;;  %v546_v27 = vmul.f32 %v1348_v16, %v540_v58  ;;  %v643_v47 = vsel %vm642_vm6, %v1599_v11, %v1536_v10 }
 0x24b   : > { %v499_v23 = vsel %vm389_vm0, %v1471_v19, 0.0  ;;  %v519_v19 = vsel %vm362_vm10, %v1477_v28, 0.0  ;;  %v606_v10 = vsel %vm389_vm0, %v1514_v48, 0.0  ;;  %vm673_vm4 = vcmask 769024  }
 0x24c   : > { %1824 = vst [vmem:[#allocation11_spill] sm:$0xff] %v1625_v50 }
 0x24f   : > { %v1635_v60 = vpop.permute.xlu1 %896 }
 0x250   : > { %1826 = vst [vmem:[#allocation13_spill] sm:$0xff] %v1635_v60  ;;  %v1645_v13 = vsel %vm900_vm3, %v1635_v60, %v899_v24  ;;  %v498_v24 = vsel %vm388_vm11, %v1462_v61, 0.0  ;;  %v505_v61 = vmul.f32 %v1343_v15, %v499_v23  ;;  %v605_v23 = vsel %vm388_vm11, %v601_v34, 0.0 }
 0x251   : > { %1827 = vst [vmem:[#allocation14_spill] sm:$0xff] %v1645_v13  ;;  %v504_v41 = vmul.f32 %v1343_v15, %v498_v24  ;;  %v525_v15 = vmul.f32 %v1306_v59, %v519_v19  ;;  %v647_v19 = vsel %vm370_vm12, %v643_v47, 0.0 }
 0x257   : > { %v448_v13 = vpop.permute.xlu1 %447 }
 0x258   : > { %v452_v60 = vsel %vm451_vm2, %v446_v55, %v448_v13  ;;  %v453_v50 = vsel %vm451_vm2, %v448_v13, %v450_v26  ;;  %v520_v26 = vsel %vm363_vm13, %v1479_v31, 0.0  ;;  %vm566_vm2 = vcmask 900096  }
 0x259   : > { %v456_v1 = vadd.f32 %v452_v60, %v1425_v39  ;;  %v457_v9 = vadd.f32 %v453_v50, %v1458_v54  ;;  %v541_v39 = vsel %vm371_vm15, %v1494_v37, 0.0  ;;  %v526_v60 = vmul.f32 %v1306_v59, %v520_v26 }
 0x25a   : > { %v547_v31 = vmul.f32 %v1348_v16, %v541_v39 }
 0x25b   : > { %v481_v54 = vadd.f32 %v479_v49, %v456_v1  ;;  %v482_v50 = vadd.f32 %v480_v6, %v457_v9  ;;  %v584_v1 = vsel %vm380_vm8, %v1482_v32, 0.0  ;;  %v668_v6 = vpop.permute.xlu2 %667  ;;  %v626_v49 = vsel %vm362_vm10, %v1521_v52, 0.0 }
 0x25c   : > { %v590_v55 = vmul.f32 %v1353_v17, %v584_v1  ;;  %v611_v32 = vmul.f32 %v1311_v62, %v605_v23  ;;  %v632_v26 = vmul.f32 %v1362_v18, %v626_v49 }
 0x25d   : > { %v506_v13 = vadd.f32 %v504_v41, %v481_v54  ;;  %v507_v28 = vadd.f32 %v505_v61, %v482_v50  ;;  %v585_v61 = vsel %vm381_vm5, %v1503_v44, 0.0  ;;  %v653_v54 = vmul.f32 %v1313_v63, %v647_v19 }
 0x25e   : > { %v591_v11 = vmul.f32 %v1353_v17, %v585_v61  ;;  %v627_v44 = vsel %vm363_vm13, %v1528_v57, 0.0  ;;  %v648_v17 = vsel %vm371_vm15, %v1540_v25, 0.0  ;;  %v844_v25 = vpop.permute.xlu0 %843 }
 0x25f   : > { %v561_v40 = vpop.permute.xlu1 %560  ;;  %v527_v24 = vadd.f32 %v525_v15, %v506_v13  ;;  %v528_v37 = vadd.f32 %v526_v60, %v507_v28  ;;  %v612_v13 = vmul.f32 %v1311_v62, %v606_v10  ;;  %v687_v28 = vsel %vm686_vm7, %v1605_v53, %v1547_v14 }
 0x260   : > { %v567_v16 = vsel %vm566_vm2, %v561_v40, %v563_v4  ;;  %v691_v57 = vsel %vm380_vm8, %v687_v28, 0.0  ;;  %v654_v34 = vmul.f32 %v1313_v63, %v648_v17  ;;  %v729_v62 = vsel %vm728_vm9, %v1615_v36, %v1572_v56 }
 0x261   : > { %v548_v59 = vadd.f32 %v546_v27, %v527_v24  ;;  %v549_v41 = vadd.f32 %v547_v31, %v528_v37  ;;  %v692_v40 = vsel %vm381_vm5, %v1551_v33, 0.0  ;;  %v697_v37 = vmul.f32 %v1315_v0, %v691_v57 }
 0x262   : > { %v713_v56 = vsel %vm389_vm0, %v1564_v51, 0.0  ;;  %v733_v36 = vsel %vm362_vm10, %v729_v62, 0.0  ;;  %v698_v33 = vmul.f32 %v1315_v0, %v692_v40  ;;  %v755_v0 = vsel %vm371_vm15, %v1586_v38, 0.0 }
 0x263   : > { %v571_v46 = vadd.f32 %v567_v16, %v548_v59  ;;  %v672_v60 = vpop.permute.xlu2 %671  ;;  %v719_v51 = vmul.f32 %v1368_v20, %v713_v56  ;;  %v739_v47 = vmul.f32 %v1317_v3, %v733_v36  ;;  %v761_v30 = vmul.f32 %v1374_v21, %v755_v0 }
 0x265   : > { %v592_v9 = vadd.f32 %v590_v55, %v571_v46 }
 0x267   : > { %v613_v58 = vadd.f32 %v611_v32, %v592_v9  ;;  %v565_v39 = vpop.permute.xlu1 %564 }
 0x268   : > { %v568_v52 = vsel %vm566_vm2, %v563_v4, %v565_v39  ;;  %v633_v4 = vmul.f32 %v1362_v18, %v627_v44  ;;  %v712_v18 = vsel %vm388_vm11, %v1559_v45, 0.0  ;;  %v734_v45 = vsel %vm363_vm13, %v1576_v8, 0.0 }
 0x269   : > { %v572_v50 = vadd.f32 %v568_v52, %v549_v41  ;;  %v634_v15 = vadd.f32 %v632_v26, %v613_v58  ;;  %v718_v41 = vmul.f32 %v1368_v20, %v712_v18  ;;  %v740_v32 = vmul.f32 %v1317_v3, %v734_v45  ;;  %v895_v20 = vpop.permute.xlu0 %894  ;;  %v1828_v58 = vld [vmem:[#allocation10_spill] sm:$0xff]  ;;  %v1829_v3 = vld [vmem:[#allocation4_spill] sm:$0xff]  ;;  %v1838_v45 = vld [vmem:[#allocation11_spill] sm:$0xff] }
 0x26a   : > { %v794_v39 = vsel %vm793_vm14, %v1828_v58, %v1593_v2  ;;  %v799_v38 = vsel %vm381_vm5, %v1829_v3, 0.0  ;;  %v1833_v2 = vld [vmem:[#allocation6_spill] sm:$0xff] }
 0x26b   : > { %v593_v48 = vadd.f32 %v591_v11, %v572_v50  ;;  %v655_v27 = vadd.f32 %v653_v54, %v634_v15  ;;  %v779_v55 = vpop.permute.xlu2 %778  ;;  %v798_v43 = vsel %vm380_vm8, %v794_v39, 0.0  ;;  %v1830_v11 = vld [vmem:[#allocation7_spill] sm:$0xff]  ;;  %v1831_v54 = vld [vmem:[#allocation12_spill] sm:$0xff]  ;;  %v1832_v15 = vld [vmem:[#allocation5_spill] sm:$0xff] }
 0x26c   : > { %v819_v44 = vsel %vm388_vm11, %v1832_v15, 0.0 }
 0x26d   : > { %v614_v31 = vadd.f32 %v612_v13, %v593_v48  ;;  %v1834_v48 = vld [vmem:[#allocation2_spill] sm:$0xff] }
 0x26e   : > { %v805_v17 = vmul.f32 %v1834_v48, %v799_v38 }
 0x26f   : > { %v670_v14 = vpop.permute.xlu1 %669  ;;  %v635_v53 = vadd.f32 %v633_v4, %v614_v31 }
 0x270   : > { %v674_v24 = vsel %vm673_vm4, %v668_v6, %v670_v14  ;;  %v675_v59 = vsel %vm673_vm4, %v670_v14, %v672_v60  ;;  %v754_v6 = vsel %vm370_vm12, %v1582_v35, 0.0  ;;  %vm780_vm12 = vcmask 637952   ;;  %v1836_v14 = vld [vmem:[#allocation3_spill] sm:$0xff] }
 0x271   : > { %v656_v1 = vadd.f32 %v654_v34, %v635_v53  ;;  %v678_v63 = vadd.f32 %v674_v24, %v655_v27  ;;  %v760_v9 = vmul.f32 %v1374_v21, %v754_v6  ;;  %v836_v21 = vsel %vm835_vm1, %v1831_v54, %v1830_v11  ;;  %v1835_v34 = vld [vmem:[#allocation8_spill] sm:$0xff]  ;;  %v1839_v6 = vld [vmem:[#allocation13_spill] sm:$0xff] }
 0x272   : > { %v820_v60 = vsel %vm389_vm0, %v1833_v2, 0.0  ;;  %v804_v27 = vmul.f32 %v1834_v48, %v798_v43  ;;  %v840_v57 = vsel %vm362_vm10, %v836_v21, 0.0  ;;  %v841_v62 = vsel %vm363_vm13, %v1835_v34, 0.0 }
 0x273   : > { %v679_v23 = vadd.f32 %v675_v59, %v656_v1  ;;  %v699_v16 = vadd.f32 %v697_v37, %v678_v63  ;;  %v918_v52 = vpop.permute.xlu2 %917  ;;  %v825_v53 = vmul.f32 %v1836_v14, %v819_v44  ;;  %v826_v40 = vmul.f32 %v1836_v14, %v820_v60  ;;  %v882_v37 = vpop.permute.xlu0 %881 }
 0x274   : > { %v846_v1 = vmul.f32 %v844_v25, %v840_v57  ;;  %v847_v63 = vmul.f32 %v844_v25, %v841_v62  ;;  %vm921_vm10 = vcmask 490496   ;;  %vm887_vm13 = vcmask 506880  }
 0x275   : > { %v700_v46 = vadd.f32 %v698_v33, %v679_v23  ;;  %v720_v49 = vadd.f32 %v718_v41, %v699_v16  ;;  %v1837_v23 = vld [vmem:[#allocation9_spill] sm:$0xff] }
 0x277   : > { %v721_v8 = vadd.f32 %v719_v51, %v700_v46  ;;  %v775_v61 = vpop.permute.xlu1 %774  ;;  %v741_v19 = vadd.f32 %v739_v47, %v720_v49  ;;  %v1840_v46 = vld [vmem:[#allocation14_spill] sm:$0xff] }
 0x278   : > { %v906_v49 = vsel %vm381_vm5, %v1840_v46, 0.0 }
 0x279   : > { %v742_v35 = vadd.f32 %v740_v32, %v721_v8  ;;  %v762_v26 = vadd.f32 %v760_v9, %v741_v19 }
 0x27b   : > { %v763_v10 = vadd.f32 %v761_v30, %v742_v35  ;;  %v886_v29 = vpop.permute.xlu2 %885  ;;  %v909_v51 = vpop.permute.xlu0 %908 }
 0x27c   : > { %v912_v30 = vmul.f32 %v909_v51, %v906_v49 }
 0x27f   : > { %v777_v50 = vpop.permute.xlu1 %776 }
 0x280   : > { %v781_v13 = vsel %vm780_vm12, %v775_v61, %v777_v50  ;;  %v782_v28 = vsel %vm780_vm12, %v777_v50, %v779_v55  ;;  %v901_v55 = vsel %vm900_vm3, %v895_v20, %v1839_v6 }
 0x281   : > { %v785_v4 = vadd.f32 %v781_v13, %v762_v26  ;;  %v786_v31 = vadd.f32 %v782_v28, %v763_v10  ;;  %v905_v25 = vsel %vm380_vm8, %v901_v55, 0.0 }
 0x282   : > { %v911_v19 = vmul.f32 %v909_v51, %v905_v25 }
 0x283   : > { %v806_v18 = vadd.f32 %v804_v27, %v785_v4  ;;  %v807_v24 = vadd.f32 %v805_v17, %v786_v31  ;;  %v930_v32 = vpop.permute.xlu2 %929  ;;  %v940_v5 = vpop.permute.xlu0 %939 }
 0x285   : > { %v827_v56 = vadd.f32 %v825_v53, %v806_v18  ;;  %v828_v36 = vadd.f32 %v826_v40, %v807_v24 }
 0x287   : > { %v916_v59 = vpop.permute.xlu1 %915  ;;  %v848_v33 = vadd.f32 %v846_v1, %v827_v56  ;;  %v849_v41 = vadd.f32 %v847_v63, %v828_v36 }
 0x288   : > { %v922_v47 = vsel %vm921_vm10, %v916_v59, %v918_v52 }
 0x289   : > { %v869_v16 = vadd.f32 %v1837_v23, %v848_v33  ;;  %v870_v42 = vadd.f32 %v1838_v45, %v849_v41  ;;  %v926_v9 = vsel %vm388_vm11, %v922_v47, 0.0 }
 0x28a   : > { %v932_v20 = vmul.f32 %v930_v32, %v926_v9 }
 0x28f   : > { %v884_v0 = vpop.permute.xlu1 %883 }
 0x290   : > { %v888_v8 = vsel %vm887_vm13, %v882_v37, %v884_v0  ;;  %v889_v61 = vsel %vm887_vm13, %v884_v0, %v886_v29 }
 0x291   : > { %v892_v35 = vadd.f32 %v888_v8, %v869_v16  ;;  %v893_v26 = vadd.f32 %v889_v61, %v870_v42 }
 0x293   : > { %v914_v58 = vadd.f32 %v912_v30, %v893_v26  ;;  %v913_v39 = vadd.f32 %v911_v19, %v892_v35 }
 0x295   : > { %v934_v10 = vadd.f32 %v932_v20, %v913_v39 }
 0x297   : > { %v942_v43 = vadd.f32 %v940_v5, %v934_v10  ;;  %v920_v3 = vpop.permute.xlu1 %919 }
 0x298   : > { %v923_v12 = vsel %vm921_vm10, %v918_v52, %v920_v3 }
 0x299   : > { %v1054_v38 = vmul.f32 -1.442695, %v942_v43  ;;  %v927_v7 = vsel %vm389_vm0, %v923_v12, 0.0 }
 0x29a   : > { %v933_v11 = vmul.f32 %v930_v32, %v927_v7 }
 0x29b   : > { %1153 = vpow2.f32 %v1054_v38 }
 0x29c   : > { %v935_v54 = vadd.f32 %v933_v11, %v914_v58 }
 0x29e   : > { %v943_v21 = vadd.f32 %v940_v5, %v935_v54 }
 0x2a0   : > { %v1055_v50 = vmul.f32 -1.442695, %v943_v21 }
 0x2a1   : > { %v1154_v15 = vpop.eup %1153 }
 0x2a2   : > { %v950_v44 = vadd.f32 1.0, %v1154_v15  ;;  %1155 = vpow2.f32 %v1055_v50 }
 0x2a4   : > { %1157 = vrcp.f32 %v950_v44  ;;  %v963_v52 = vand.u32 2147483648, %v950_v44  ;;  %v961_v22 = vand.u32 2147483647, %v950_v44  ;;  %vm957_vm6 = vweird.f32 %v950_v44 }
 0x2a6   : > { %v964_v31 = vor.u32 1.1754944e-38, %v963_v52  ;;  %vm962_vm9 = vcmp.eq.f32.partialorder %v961_v22, 8.507059e+37 }
 0x2a8   : > { %v1156_v2 = vpop.eup %1155 }
 0x2a9   : > { %v951_v60 = vadd.f32 1.0, %v1156_v2 }
 0x2aa   : > { %v1158_v13 = vpop.eup %1157 }
 0x2ab   : > { %v953_v28 = vmul.f32 %v1158_v13, %v950_v44  ;;  %1159 = vrcp.f32 %v951_v60  ;;  %vm958_vm15 = vweird.f32 %v1158_v13  ;;  %v978_v40 = vand.u32 2147483648, %v951_v60 }
 0x2ac   : > { %vm959_vm7 = vmor %vm957_vm6, %vm958_vm15  ;;  %v976_v24 = vand.u32 2147483647, %v951_v60  ;;  %vm972_vm1 = vweird.f32 %v951_v60 }
 0x2ad   : > { %v954_v48 = vsub.f32 1.0, %v953_v28  ;;  %v979_v1 = vor.u32 1.1754944e-38, %v978_v40 }
 0x2ae   : > { %vm977_vm5 = vcmp.eq.f32.partialorder %v976_v24, 8.507059e+37 }
 0x2af   : > { %v955_v27 = vmul.f32 %v1158_v13, %v954_v48 }
 0x2b1   : > { %v1160_v17 = vpop.eup %1159  ;;  %v956_v4 = vadd.f32 %v1158_v13, %v955_v27 }
 0x2b2   : > { %v968_v57 = vmul.f32 %v1160_v17, %v951_v60  ;;  %vm973_vm14 = vweird.f32 %v1160_v17 }
 0x2b3   : > { %v960_v34 = vsel %vm959_vm7, %v1158_v13, %v956_v4  ;;  %vm974_vm3 = vmor %vm972_vm1, %vm973_vm14 }
 0x2b4   : > { %v965_v62 = vsel %vm962_vm9, %v964_v31, %v960_v34  ;;  %v969_v14 = vsub.f32 1.0, %v968_v57 }
 0x2b5   : > { %v982_v53 = vmul.f32 %v965_v62, %v942_v43 }
 0x2b6   : > { %v970_v18 = vmul.f32 %v1160_v17, %v969_v14 }
 0x2b7   : > { %984 = vst [vmem:[%s1300_s8 + $0x10] sm:$0xff] %v982_v53 }
 0x2b8   : > { %v971_v37 = vadd.f32 %v1160_v17, %v970_v18 }
 0x2ba   : > { %v975_v63 = vsel %vm974_vm3, %v1160_v17, %v971_v37 }
 0x2bb   : > { %v980_v56 = vsel %vm977_vm5, %v979_v1, %v975_v63 }
 0x2bc   : > { %v983_v36 = vmul.f32 %v980_v56, %v943_v21 }
 0x2be   : > { %985 = vst [vmem:[%s1300_s8 + $0x18] sm:$0xff] %v983_v36 }
 0x2bf PF: > { %s15_s18 = sadd.s32 1, %s1167_s18  }
 0x2c0   : > { %p12_p4 = scmp.ge.s32.totalorder %s15_s18, 4  }
 0x2c2   :  { %14 = sbr.rel (!%p12_p4) target bundleno = 1 (0x1), region = 70 }

</bundles_post_ra>
